<compile_context>
chip_gen: v6e
topology: v6e:2x2x1
jax: 0.10.0
libtpu: 0.0.40
codegen_flags: <defaults>
</compile_context>

<pallas_src>
import jax
import jax.numpy as jnp
from jax.experimental import pallas as pl
from jax.experimental.pallas import tpu as pltpu


BATCH_BLK = 128    # rows per grid step: MXU row height, >= bf16 sublane pack
A_PAD = 128        # action dim padded to one full lane register
OUT_LANES = 128    # packed output: lane 0 = action (as f32), lane 1 = log_prob
NEG_BIG = -1e30    # bias of padded action lanes: never wins max, exp() == 0


def policy_kernel(state_ref,              # (BLK, 1)      f32
                  gumbel_ref,             # (BLK, A_PAD)  f32
                  w1_ref, b1_ref,         # (1, H) f32,   (1, H) f32
                  w2_ref, b2_ref,         # (H, H) bf16,  (1, H) f32
                  w3_ref, b3_ref,         # (H, A_PAD) bf16, (1, A_PAD) f32
                  out_ref):               # (BLK, OUT_LANES) f32
    blk = out_ref.shape[0]

    # ---- fc1 + relu.  K == 1, so a VPU broadcast multiply replaces the
    # degenerate (BLK,1)@(1,H) MXU outer product.
    x = state_ref[...]                                               # (BLK, 1)
    h1 = jnp.maximum(x * w1_ref[...] + b1_ref[...], 0.0)             # (BLK, H)

    # ---- fc2 + relu: bf16 MXU matmul, f32 accumulation.
    h2 = jnp.dot(h1.astype(jnp.bfloat16), w2_ref[...],
                 preferred_element_type=jnp.float32) + b2_ref[...]
    h2 = jnp.maximum(h2, 0.0)                                        # (BLK, H)

    # ---- fc3 -> logits over a full 128-lane register; pad lanes carry NEG_BIG.
    logits = jnp.dot(h2.astype(jnp.bfloat16), w3_ref[...],
                     preferred_element_type=jnp.float32) + b3_ref[...]   # (BLK, 128)

    # ---- log-softmax (matches torch.distributions.Categorical(logits=...)).
    # Pad lanes contribute exp(-1e30 - m) == 0 to the sum.
    m = jnp.max(logits, axis=-1, keepdims=True)
    z = logits - m
    lse = jnp.log(jnp.sum(jnp.exp(z), axis=-1, keepdims=True))
    log_probs = z - lse                                              # (BLK, 128)

    # ---- Categorical sample via Gumbel-max (first index attaining the max).
    g = logits + gumbel_ref[...]                                     # (BLK, 128)
    gmax = jnp.max(g, axis=-1, keepdims=True)
    col = jax.lax.broadcasted_iota(jnp.int32, g.shape, 1)
    action = jnp.min(jnp.where(g >= gmax, col, A_PAD),
                     axis=-1, keepdims=True)                         # (BLK, 1) int32

    # ---- log_prob = log_probs[row, action]  (action is always a real lane).
    lp = jnp.sum(jnp.where(col == action, log_probs, 0.0),
                 axis=-1, keepdims=True)                             # (BLK, 1)

    # ---- Lane-dense packed output: action (as f32) in lane 0, log_prob in lane 1.
    lane = jax.lax.broadcasted_iota(jnp.int32, (blk, OUT_LANES), 1)
    out_ref[...] = jnp.where(lane == 0, action.astype(jnp.float32),
                             jnp.where(lane == 1, lp, 0.0))


def init_params(key, state_dim, action_dim, hidden_dim):
    """Deterministic init mimicking torch.nn.Linear (uniform +/- 1/sqrt(fan_in)).
    Weights stored [in, out] (transposed vs torch); fc2/fc3 weights in bf16.
    fc3 is lane-padded to A_PAD: zero weight columns, NEG_BIG bias in pad lanes."""
    ks = jax.random.split(key, 6)

    def lin(kw, kb, fan_in, fan_out):
        bound = fan_in ** -0.5
        w = jax.random.uniform(kw, (fan_in, fan_out), jnp.float32, -bound, bound)
        b = jax.random.uniform(kb, (1, fan_out), jnp.float32, -bound, bound)
        return w, b

    w1, b1 = lin(ks[0], ks[1], state_dim, hidden_dim)                 # VPU path, f32
    w2, b2 = lin(ks[2], ks[3], hidden_dim, hidden_dim)                # MXU bf16
    w3, b3 = lin(ks[4], ks[5], hidden_dim, action_dim)                # MXU bf16

    w3p = jnp.zeros((hidden_dim, A_PAD), jnp.float32).at[:, :action_dim].set(w3)
    b3p = jnp.full((1, A_PAD), NEG_BIG, jnp.float32).at[:, :action_dim].set(b3)

    return (w1, b1, w2.astype(jnp.bfloat16), b2,
            w3p.astype(jnp.bfloat16), b3p)


def policy_forward(state, params, key):
    """state: (B, 1) f32. Returns (action int32 (B,), log_prob f32 (B,))."""
    w1, b1, w2, b2, w3, b3 = params
    B, state_dim = state.shape
    assert state_dim == 1  # fc1 is a VPU broadcast multiply (K == 1)
    H = w2.shape[0]

    n_blocks = pl.cdiv(B, BATCH_BLK)
    if n_blocks > 1 and n_blocks % 2:
        n_blocks += 1          # even block count -> balanced shards on v7x's 2 TCs
    b_pad = n_blocks * BATCH_BLK

    state_p = jnp.pad(state, ((0, b_pad - B), (0, 0)))

    # Host-side Gumbel noise (pltpu.prng_* has no interpret/CPU lowering).
    # TODO(synk): Gumbel-max sampling matches Categorical.sample() in
    # distribution, but not torch's exact RNG stream.
    gumbel = jax.random.gumbel(key, (b_pad, A_PAD), dtype=jnp.float32)

    grid_spec = pltpu.PrefetchScalarGridSpec(
        num_scalar_prefetch=0,
        grid=(n_blocks,),
        in_specs=[
            pl.BlockSpec((BATCH_BLK, 1), lambda i: (i, 0)),        # state: streamed
            pl.BlockSpec((BATCH_BLK, A_PAD), lambda i: (i, 0)),    # gumbel: streamed
            pl.BlockSpec((1, H), lambda i: (0, 0)),                # w1 \
            pl.BlockSpec((1, H), lambda i: (0, 0)),                # b1  | constant index_map:
            pl.BlockSpec((H, H), lambda i: (0, 0)),                # w2  | weights DMA'd once,
            pl.BlockSpec((1, H), lambda i: (0, 0)),                # b2  | VMEM-resident across
            pl.BlockSpec((H, A_PAD), lambda i: (0, 0)),            # w3  | the whole grid
            pl.BlockSpec((1, A_PAD), lambda i: (0, 0)),            # b3 /
        ],
        out_specs=pl.BlockSpec((BATCH_BLK, OUT_LANES), lambda i: (i, 0)),
    )

    out = pl.pallas_call(
        policy_kernel,
        out_shape=jax.ShapeDtypeStruct((b_pad, OUT_LANES), jnp.float32),
        grid_spec=grid_spec,
        compiler_params=pltpu.CompilerParams(
            dimension_semantics=("parallel",)),
    )(state_p, gumbel, w1, b1, w2, b2, w3, b3)

    action = out[:B, 0].astype(jnp.int32)
    log_prob = out[:B, 1]
    return action, log_prob


if __name__ == "__main__":
    # Module-implied shapes: state_dim = 1 (demand scalar), action_dim = 2, hidden = 256.
    state_dim, action_dim, hidden_dim = 1, 2, 256

    key = jax.random.PRNGKey(0)
    pkey, nkey = jax.random.split(key)
    params = init_params(pkey, state_dim, action_dim, hidden_dim)

    # Batch of states: 4 rollouts over the 5-step electricity plan (B = 20, padded to 128).
    plan = jnp.array([100.0, 200.0, 150.0, 300.0, 250.0], dtype=jnp.float32)
    state = jnp.tile(plan, 4).reshape(-1, 1)                     # (20, 1)

    action, log_prob = policy_forward(state, params, nkey)
    jax.block_until_ready((action, log_prob))

    B = state.shape[0]
    assert action.shape == (B,) and action.dtype == jnp.int32
    assert log_prob.shape == (B,) and log_prob.dtype == jnp.float32
    assert bool(jnp.all((action >= 0) & (action < action_dim)))
    assert bool(jnp.all(log_prob <= 0.0))

    print("KERNEL_OK")
</pallas_src>

<mosaic_0001>
module attributes {stable_mosaic.version = 11 : i64} {
  func.func @policy_kernel(%arg0: i32, %arg1: memref<128x1xf32, #tpu.memory_space<vmem>>, %arg2: memref<128x128xf32, #tpu.memory_space<vmem>>, %arg3: memref<1x256xf32, #tpu.memory_space<vmem>>, %arg4: memref<1x256xf32, #tpu.memory_space<vmem>>, %arg5: memref<256x256xbf16, #tpu.memory_space<vmem>>, %arg6: memref<1x256xf32, #tpu.memory_space<vmem>>, %arg7: memref<256x128xbf16, #tpu.memory_space<vmem>>, %arg8: memref<1x128xf32, #tpu.memory_space<vmem>>, %arg9: memref<128x128xf32, #tpu.memory_space<vmem>>) attributes {dimension_semantics = [#tpu.dimension_semantics<parallel>], iteration_bounds = array<i64: 1>, scalar_prefetch = 0 : i64, scratch_operands = 0 : i64, tpu.core_type = #tpu.core_type<tc>, window_params = [{transform_indices = @transform_0, window_bounds = array<i64: 128, 1>}, {transform_indices = @transform_1, window_bounds = array<i64: 128, 128>}, {pipeline_mode = #tpu.pipeline_mode<synchronous>, transform_indices = @transform_2, window_bounds = array<i64: 1, 256>}, {pipeline_mode = #tpu.pipeline_mode<synchronous>, transform_indices = @transform_3, window_bounds = array<i64: 1, 256>}, {pipeline_mode = #tpu.pipeline_mode<synchronous>, transform_indices = @transform_4, window_bounds = array<i64: 256, 256>}, {pipeline_mode = #tpu.pipeline_mode<synchronous>, transform_indices = @transform_5, window_bounds = array<i64: 1, 256>}, {pipeline_mode = #tpu.pipeline_mode<synchronous>, transform_indices = @transform_6, window_bounds = array<i64: 256, 128>}, {pipeline_mode = #tpu.pipeline_mode<synchronous>, transform_indices = @transform_7, window_bounds = array<i64: 1, 128>}, {transform_indices = @transform_8, window_bounds = array<i64: 128, 128>}]} {
    %c0 = arith.constant 0 : index
    %c0_0 = arith.constant 0 : index
    %0 = vector.load %arg1[%c0, %c0_0] : memref<128x1xf32, #tpu.memory_space<vmem>>, vector<128x1xf32>
    %c0_1 = arith.constant 0 : index
    %c0_2 = arith.constant 0 : index
    %1 = vector.load %arg3[%c0_1, %c0_2] : memref<1x256xf32, #tpu.memory_space<vmem>>, vector<1x256xf32>
    %2 = vector.broadcast %0 : vector<128x1xf32> to vector<128x256xf32>
    %3 = vector.broadcast %1 : vector<1x256xf32> to vector<128x256xf32>
    %4 = arith.mulf %2, %3 : vector<128x256xf32>
    %c0_3 = arith.constant 0 : index
    %c0_4 = arith.constant 0 : index
    %5 = vector.load %arg4[%c0_3, %c0_4] : memref<1x256xf32, #tpu.memory_space<vmem>>, vector<1x256xf32>
    %6 = vector.broadcast %5 : vector<1x256xf32> to vector<128x256xf32>
    %7 = arith.addf %4, %6 : vector<128x256xf32>
    %cst = arith.constant 0.000000e+00 : f32
    %8 = vector.broadcast %cst : f32 to vector<128x256xf32>
    %9 = arith.maximumf %7, %8 : vector<128x256xf32>
    %10 = arith.truncf %9 : vector<128x256xf32> to vector<128x256xbf16>
    %c0_5 = arith.constant 0 : index
    %c0_6 = arith.constant 0 : index
    %11 = vector.load %arg5[%c0_5, %c0_6] : memref<256x256xbf16, #tpu.memory_space<vmem>>, vector<256x256xbf16>
    %cst_7 = arith.constant dense<0.000000e+00> : vector<128x256xf32>
    %12 = tpu.matmul %10, %11, %cst_7 {dimension_numbers = #tpu.dot_dimension_numbers<[1], [0], [0], [1], [0, 0, 1, 1], [], []>} : vector<128x256xbf16>, vector<256x256xbf16>, vector<128x256xf32> -> vector<128x256xf32>
    %c0_8 = arith.constant 0 : index
    %c0_9 = arith.constant 0 : index
    %13 = vector.load %arg6[%c0_8, %c0_9] : memref<1x256xf32, #tpu.memory_space<vmem>>, vector<1x256xf32>
    %14 = vector.broadcast %13 : vector<1x256xf32> to vector<128x256xf32>
    %15 = arith.addf %12, %14 : vector<128x256xf32>
    %cst_10 = arith.constant 0.000000e+00 : f32
    %16 = vector.broadcast %cst_10 : f32 to vector<128x256xf32>
    %17 = arith.maximumf %15, %16 : vector<128x256xf32>
    %18 = arith.truncf %17 : vector<128x256xf32> to vector<128x256xbf16>
    %c0_11 = arith.constant 0 : index
    %c0_12 = arith.constant 0 : index
    %19 = vector.load %arg7[%c0_11, %c0_12] : memref<256x128xbf16, #tpu.memory_space<vmem>>, vector<256x128xbf16>
    %cst_13 = arith.constant dense<0.000000e+00> : vector<128x128xf32>
    %20 = tpu.matmul %18, %19, %cst_13 {dimension_numbers = #tpu.dot_dimension_numbers<[1], [0], [0], [1], [0, 0, 1, 1], [], []>} : vector<128x256xbf16>, vector<256x128xbf16>, vector<128x128xf32> -> vector<128x128xf32>
    %c0_14 = arith.constant 0 : index
    %c0_15 = arith.constant 0 : index
    %21 = vector.load %arg8[%c0_14, %c0_15] : memref<1x128xf32, #tpu.memory_space<vmem>>, vector<1x128xf32>
    %22 = vector.broadcast %21 : vector<1x128xf32> to vector<128x128xf32>
    %23 = arith.addf %20, %22 : vector<128x128xf32>
    %cst_16 = arith.constant dense<0xFF800000> : vector<128xf32>
    %24 = vector.multi_reduction <maximumf>, %23, %cst_16 [1] : vector<128x128xf32> to vector<128xf32>
    %25 = vector.shape_cast %24 : vector<128xf32> to vector<128x1xf32>
    %26 = vector.broadcast %25 : vector<128x1xf32> to vector<128x128xf32>
    %27 = arith.subf %23, %26 : vector<128x128xf32>
    %28 = math.exp %27 : vector<128x128xf32>
    %cst_17 = arith.constant dense<0.000000e+00> : vector<128xf32>
    %29 = vector.multi_reduction <add>, %28, %cst_17 [1] : vector<128x128xf32> to vector<128xf32>
    %30 = vector.shape_cast %29 : vector<128xf32> to vector<128x1xf32>
    %31 = math.log %30 : vector<128x1xf32>
    %32 = vector.broadcast %31 : vector<128x1xf32> to vector<128x128xf32>
    %33 = arith.subf %27, %32 : vector<128x128xf32>
    %c0_18 = arith.constant 0 : index
    %c0_19 = arith.constant 0 : index
    %34 = vector.load %arg2[%c0_18, %c0_19] : memref<128x128xf32, #tpu.memory_space<vmem>>, vector<128x128xf32>
    %35 = arith.addf %23, %34 : vector<128x128xf32>
    %cst_20 = arith.constant dense<0xFF800000> : vector<128xf32>
    %36 = vector.multi_reduction <maximumf>, %35, %cst_20 [1] : vector<128x128xf32> to vector<128xf32>
    %37 = vector.shape_cast %36 : vector<128xf32> to vector<128x1xf32>
    %38 = tpu.iota {dimensions = array<i32: 1>} : vector<128x128xi32>
    %39 = vector.broadcast %37 : vector<128x1xf32> to vector<128x128xf32>
    %40 = arith.cmpf oge, %35, %39 : vector<128x128xf32>
    %c128_i32 = arith.constant 128 : i32
    %41 = vector.broadcast %c128_i32 : i32 to vector<128x128xi32>
    %42 = arith.select %40, %38, %41 : vector<128x128xi1>, vector<128x128xi32>
    %cst_21 = arith.constant dense<2147483647> : vector<128xi32>
    %43 = vector.multi_reduction <minsi>, %42, %cst_21 [1] : vector<128x128xi32> to vector<128xi32>
    %44 = vector.shape_cast %43 : vector<128xi32> to vector<128x1xi32>
    %45 = vector.broadcast %44 : vector<128x1xi32> to vector<128x128xi32>
    %46 = arith.cmpi eq, %38, %45 : vector<128x128xi32>
    %cst_22 = arith.constant 0.000000e+00 : f32
    %47 = vector.broadcast %cst_22 : f32 to vector<128x128xf32>
    %48 = arith.select %46, %33, %47 : vector<128x128xi1>, vector<128x128xf32>
    %cst_23 = arith.constant dense<0.000000e+00> : vector<128xf32>
    %49 = vector.multi_reduction <add>, %48, %cst_23 [1] : vector<128x128xf32> to vector<128xf32>
    %50 = vector.shape_cast %49 : vector<128xf32> to vector<128x1xf32>
    %51 = tpu.iota {dimensions = array<i32: 1>} : vector<128x128xi32>
    %c0_i32 = arith.constant 0 : i32
    %52 = vector.broadcast %c0_i32 : i32 to vector<128x128xi32>
    %53 = arith.cmpi eq, %51, %52 : vector<128x128xi32>
    %54 = arith.sitofp %44 : vector<128x1xi32> to vector<128x1xf32>
    %c1_i32 = arith.constant 1 : i32
    %55 = vector.broadcast %c1_i32 : i32 to vector<128x128xi32>
    %56 = arith.cmpi eq, %51, %55 : vector<128x128xi32>
    %cst_24 = arith.constant 0.000000e+00 : f32
    %57 = vector.shape_cast %50 : vector<128x1xf32> to vector<128x1xf32>
    %58 = vector.broadcast %57 : vector<128x1xf32> to vector<128x128xf32>
    %59 = vector.broadcast %cst_24 : f32 to vector<128x128xf32>
    %60 = arith.select %56, %58, %59 : vector<128x128xi1>, vector<128x128xf32>
    %61 = vector.shape_cast %54 : vector<128x1xf32> to vector<128x1xf32>
    %62 = vector.broadcast %61 : vector<128x1xf32> to vector<128x128xf32>
    %63 = arith.select %53, %62, %60 : vector<128x128xi1>, vector<128x128xf32>
    %c0_25 = arith.constant 0 : index
    %c0_26 = arith.constant 0 : index
    %64 = vector.load %arg9[%c0_25, %c0_26] : memref<128x128xf32, #tpu.memory_space<vmem>>, vector<128x128xf32>
    tpu.vector_store %arg9[%c0_25, %c0_26], %63 {strides = array<i32>} : memref<128x128xf32, #tpu.memory_space<vmem>>, vector<128x128xf32>,
    return
  }
  func.func @transform_0(%arg0: i32) -> (i32, i32) {
    %c0_i32 = arith.constant 0 : i32
    %c0_i32_0 = arith.constant 0 : i32
    return %arg0, %c0_i32 : i32, i32
  }
  func.func @transform_1(%arg0: i32) -> (i32, i32) {
    %c0_i32 = arith.constant 0 : i32
    %c0_i32_0 = arith.constant 0 : i32
    return %arg0, %c0_i32 : i32, i32
  }
  func.func @transform_2(%arg0: i32) -> (i32, i32) {
    %c0_i32 = arith.constant 0 : i32
    %c0_i32_0 = arith.constant 0 : i32
    %c0_i32_1 = arith.constant 0 : i32
    return %c0_i32, %c0_i32_0 : i32, i32
  }
  func.func @transform_3(%arg0: i32) -> (i32, i32) {
    %c0_i32 = arith.constant 0 : i32
    %c0_i32_0 = arith.constant 0 : i32
    %c0_i32_1 = arith.constant 0 : i32
    return %c0_i32, %c0_i32_0 : i32, i32
  }
  func.func @transform_4(%arg0: i32) -> (i32, i32) {
    %c0_i32 = arith.constant 0 : i32
    %c0_i32_0 = arith.constant 0 : i32
    %c0_i32_1 = arith.constant 0 : i32
    return %c0_i32, %c0_i32_0 : i32, i32
  }
  func.func @transform_5(%arg0: i32) -> (i32, i32) {
    %c0_i32 = arith.constant 0 : i32
    %c0_i32_0 = arith.constant 0 : i32
    %c0_i32_1 = arith.constant 0 : i32
    return %c0_i32, %c0_i32_0 : i32, i32
  }
  func.func @transform_6(%arg0: i32) -> (i32, i32) {
    %c0_i32 = arith.constant 0 : i32
    %c0_i32_0 = arith.constant 0 : i32
    %c0_i32_1 = arith.constant 0 : i32
    return %c0_i32, %c0_i32_0 : i32, i32
  }
  func.func @transform_7(%arg0: i32) -> (i32, i32) {
    %c0_i32 = arith.constant 0 : i32
    %c0_i32_0 = arith.constant 0 : i32
    %c0_i32_1 = arith.constant 0 : i32
    return %c0_i32, %c0_i32_0 : i32, i32
  }
  func.func @transform_8(%arg0: i32) -> (i32, i32) {
    %c0_i32 = arith.constant 0 : i32
    %c0_i32_0 = arith.constant 0 : i32
    return %arg0, %c0_i32 : i32, i32
  }
}

</mosaic_0001>

<bundles_post_ra>
// kernel: tpu_custom_call.1
= control target key start
LH: loop header
LB: loop body
LE: loop exit
PB: predicated region body
PF: predicated region fallthrough
CT: control target
= control target key end

     0   :  { %13 = vsyncpa [#allocation3], 0  ;;  %s2734_s0 = inlined_call_operand.vmem [shape: f32[128,1], index: 0, kind: input, shape index: {}]   ;;  %s2735_s1 = inlined_call_operand.vmem [shape: f32[128,128], index: 1, kind: input, shape index: {}]   ;;  %s2736_s2 = inlined_call_operand.vmem [shape: f32[1,256], index: 2, kind: input, shape index: {}]   ;;  %s2737_s3 = inlined_call_operand.vmem [shape: f32[1,256], index: 3, kind: input, shape index: {}]   ;;  %s2738_s4 = inlined_call_operand.hbm [shape: bf16[256,256], index: 4, kind: input, shape index: {}]   ;;  %s2739_s5 = inlined_call_operand.vmem [shape: f32[1,256], index: 5, kind: input, shape index: {}]   ;;  %s2740_s6 = inlined_call_operand.hbm [shape: bf16[256,128], index: 6, kind: input, shape index: {}]   ;;  %s2741_s7 = inlined_call_operand.vmem [shape: f32[1,128], index: 7, kind: input, shape index: {}]   ;;  %s2742_s8 = inlined_call_operand.hbm [shape: f32[128,128], index: 8, kind: output, shape index: {}]  }
   0x1   :  { %14 = vsyncpa [#allocation6], 0 }
   0x2   :  { %15 = vsyncpa [#allocation4], 0  ;;  %s1835_s27 = smov [#allocation2]  }
   0x3   :  { %s29_s28 = sshll.u32 %s1835_s27, 4  ;;  %s30_s28 = int_to_ptr.vmem [resolvable:$true] %s29_s28 }
   0x4   :  { %s1777_s29 = scalar_lea.vmem %s30_s28, 4096  ;;  %p1782_p1 = scmp.lt.s32.totalorder %s30_s28, %s30_s28 }
   0x5   :  { %p1778_p0 = scmp.ne.s32.totalorder %s30_s28, %s1777_s29  ;;  %p1783_p2 = scmp.lt.s32.totalorder %s1777_s29, %s1777_s29 }
   0x7   :  { %p1784_p3 = por %p1783_p2, %p1782_p1 }
   0x9   :  { %p1785_p4 = pnand %p1784_p3, %p1778_p0 }
   0xb   :  { %1788 = shalt.err (!%p1785_p4)
}
   0xc   :  { %s1836_s30 = smov 128   ;;  %s1837_s9 = smov 8  }
   0xd   :  { %35 = dma.hbm_to_vmem [thread:$0]  %s2738_s4, 4096, %s30_s28, [#allocation3], %s1836_s30, %s1836_s30, %s1837_s9  }
   0xe   :  { %s1838_s12 = smov [#allocation5]  }
   0xf   :  { %s43_s13 = sshll.u32 %s1838_s12, 4  ;;  %s44_s13 = int_to_ptr.vmem [resolvable:$true] %s43_s13 }
  0x10   :  { %s1797_s14 = scalar_lea.vmem %s44_s13, 2048  ;;  %p1802_p6 = scmp.lt.s32.totalorder %s44_s13, %s44_s13 }
  0x11   :  { %p1798_p5 = scmp.ne.s32.totalorder %s44_s13, %s1797_s14  ;;  %p1803_p7 = scmp.lt.s32.totalorder %s1797_s14, %s1797_s14 }
  0x13   :  { %p1804_p8 = por %p1803_p7, %p1802_p6 }
  0x15   :  { %p1805_p9 = pnand %p1804_p8, %p1798_p5 }
  0x17   :  { %1808 = shalt.err (!%p1805_p9)
}
  0x18   :  { %s1839_s15 = smov 64   ;;  %s1840_s16 = smov 4  }
  0x19   :  { %49 = dma.hbm_to_vmem [thread:$0]  %s2740_s6, 2048, %s44_s13, [#allocation6], %s1839_s15, %s1839_s15, %s1840_s16  }
  0x1a   :  { %1829 = dma.done.wait [#allocation3], 4096  }
  0x1b   :  { %1830 = vsyncadd [#allocation3], 4294963200 }
  0x1c   :  { %1831 = dma.done.wait [#allocation6], 2048  }
  0x1d   :  { %1832 = vsyncadd [#allocation6], 4294965248  ;;  %v1841_v0 = vmov 0   ;;  %v61_v1 = vld [vmem:[%s2734_s0 + $0x10] sm:$0xff]  ;;  %v59_v2 = vld [vmem:[%s2734_s0] sm:$0xff]  ;;  %v157_v59 = vlaneseq }
  0x1e   :  { %1640 = vset.pattern.permute.xlu1 %v1841_v0  ;;  %1639 = vset.pattern.permute.xlu0 %v1841_v0  ;;  %v62_v3 = vld [vmem:[%s2734_s0 + $0x18] sm:$0xff]  ;;  %v60_v4 = vld [vmem:[%s2734_s0 + $0x8] sm:$0xff]  ;;  %v63_v6 = vld [vmem:[%s2734_s0 + $0x20] sm:$0xff] }
  0x1f   :  { %88 = vperm.xlu1 %1640, %v61_v1   ;;  %78 = vperm.xlu0 %1639, %v59_v2   ;;  %v64_v5 = vld [vmem:[%s2734_s0 + $0x28] sm:$0xff]  ;;  %v1641_v7 = vld [vmem:[#allocation2 + $0x74] ss:$8 sps:$4 sm:$0xff]   ;;  %v1643_v8 = vld [vmem:[#allocation2 + $0x70] ss:$8 sps:$4 sm:$0xff]   ;;  %v158_v60 = vshrl.u32 %v157_v59, 7 }
  0x20   :  { %v1644_v9 = vld [vmem:[#allocation2 + $0x64] ss:$8 sps:$4 sm:$0xff]   ;;  %495 = vmatprep.subr.bf16.mxu0 %v1641_v7  ;;  %v66_v10 = vld [vmem:[%s2734_s0 + $0x38] sm:$0xff]  ;;  %v65_v11 = vld [vmem:[%s2734_s0 + $0x30] sm:$0xff] }
  0x21   :  { %496 = vmatpush1.bf16.msra.mxu0 %v1643_v8  ;;  %v1646_v12 = vld [vmem:[#allocation2 + $0x60] ss:$8 sps:$4 sm:$0xff]   ;;  %v1647_v13 = vld [vmem:[#allocation2 + $0x54] ss:$8 sps:$4 sm:$0xff]   ;;  %v1649_v16 = vld [vmem:[#allocation2 + $0x50] ss:$8 sps:$4 sm:$0xff]  }
  0x22   :  { %497 = vmatprep.subr.bf16.mxu0 %v1644_v9  ;;  %v68_v14 = vld [vmem:[%s2734_s0 + $0x48] sm:$0xff]  ;;  %v67_v15 = vld [vmem:[%s2734_s0 + $0x40] sm:$0xff]  ;;  %v70_v18 = vld [vmem:[%s2734_s0 + $0x58] sm:$0xff]  ;;  %v1946_v61 = vsub.s32 0, %v158_v60  ;;  %v1948_v62 = vsub.s32 1, %v158_v60 }
  0x23   :  { %93 = vperm.xlu1 %1640, %v62_v3   ;;  %83 = vperm.xlu0 %1639, %v60_v4   ;;  %v1650_v17 = vld [vmem:[#allocation2 + $0x44] ss:$8 sps:$4 sm:$0xff]   ;;  %v69_v19 = vld [vmem:[%s2734_s0 + $0x50] sm:$0xff]  ;;  %v1652_v20 = vld [vmem:[#allocation2 + $0x40] ss:$8 sps:$4 sm:$0xff]  }
  0x24   :  { %v1653_v21 = vld [vmem:[#allocation2 + $0x34] ss:$8 sps:$4 sm:$0xff]   ;;  %v72_v22 = vld [vmem:[%s2734_s0 + $0x68] sm:$0xff]  ;;  %v71_v23 = vld [vmem:[%s2734_s0 + $0x60] sm:$0xff] }
  0x25   :  { %498 = vmatpush1.bf16.msra.mxu0 %v1646_v12  ;;  %v1655_v24 = vld [vmem:[#allocation2 + $0x30] ss:$8 sps:$4 sm:$0xff]   ;;  %v1656_v25 = vld [vmem:[#allocation2 + $0x24] ss:$8 sps:$4 sm:$0xff]   ;;  %v1658_v28 = vld [vmem:[#allocation2 + $0x20] ss:$8 sps:$4 sm:$0xff]  }
  0x26   :  { %499 = vmatprep.subr.bf16.mxu0 %v1647_v13  ;;  %v74_v26 = vld [vmem:[%s2734_s0 + $0x78] sm:$0xff]  ;;  %v73_v27 = vld [vmem:[%s2734_s0 + $0x70] sm:$0xff]  ;;  %v1662_v31 = vld [vmem:[#allocation2 + $0x4] ss:$8 sps:$4 sm:$0xff]  }
  0x27   :  { %103 = vperm.xlu1 %1640, %v64_v5   ;;  %98 = vperm.xlu0 %1639, %v63_v6   ;;  %v1659_v29 = vld [vmem:[#allocation2 + $0x14] ss:$8 sps:$4 sm:$0xff]   ;;  %v1661_v30 = vld [vmem:[#allocation2 + $0x10] ss:$8 sps:$4 sm:$0xff]   ;;  %v1664_v32 = vld [vmem:[#allocation2] ss:$8 sps:$4 sm:$0xff]  }
  0x28   :  { %v1665_v33 = vld [vmem:[#allocation2 + $0xf4] ss:$8 sps:$4 sm:$0xff]   ;;  %v1667_v34 = vld [vmem:[#allocation2 + $0xf0] ss:$8 sps:$4 sm:$0xff]   ;;  %v1668_v35 = vld [vmem:[#allocation2 + $0xe4] ss:$8 sps:$4 sm:$0xff]  }
  0x29   :  { %500 = vmatpush1.bf16.msra.mxu0 %v1649_v16  ;;  %v1670_v36 = vld [vmem:[#allocation2 + $0xe0] ss:$8 sps:$4 sm:$0xff]   ;;  %v1671_v37 = vld [vmem:[#allocation2 + $0xd4] ss:$8 sps:$4 sm:$0xff]   ;;  %v1673_v38 = vld [vmem:[#allocation2 + $0xd0] ss:$8 sps:$4 sm:$0xff]  }
  0x2a   :  { %501 = vmatprep.subr.bf16.mxu0 %v1650_v17  ;;  %v1674_v39 = vld [vmem:[#allocation2 + $0xc4] ss:$8 sps:$4 sm:$0xff]   ;;  %v1676_v40 = vld [vmem:[#allocation2 + $0xc0] ss:$8 sps:$4 sm:$0xff]   ;;  %v1677_v41 = vld [vmem:[#allocation2 + $0xb4] ss:$8 sps:$4 sm:$0xff]  }
  0x2b   :  { %113 = vperm.xlu1 %1640, %v66_v10   ;;  %108 = vperm.xlu0 %1639, %v65_v11   ;;  %v1679_v42 = vld [vmem:[#allocation2 + $0xb0] ss:$8 sps:$4 sm:$0xff]   ;;  %v1680_v43 = vld [vmem:[#allocation2 + $0xa4] ss:$8 sps:$4 sm:$0xff]   ;;  %v1682_v44 = vld [vmem:[#allocation2 + $0xa0] ss:$8 sps:$4 sm:$0xff]  }
  0x2c   :  { %v1683_v45 = vld [vmem:[#allocation2 + $0x94] ss:$8 sps:$4 sm:$0xff]   ;;  %v1685_v46 = vld [vmem:[#allocation2 + $0x90] ss:$8 sps:$4 sm:$0xff]   ;;  %v1686_v47 = vld [vmem:[#allocation2 + $0x84] ss:$8 sps:$4 sm:$0xff]  }
  0x2d   :  { %502 = vmatpush1.bf16.msra.mxu0 %v1652_v20  ;;  %v1688_v48 = vld [vmem:[#allocation2 + $0x80] ss:$8 sps:$4 sm:$0xff]   ;;  %v1689_v49 = vld [vmem:[#allocation5 + $0x78] sm:$0xff]   ;;  %v1691_v51 = vld [vmem:[#allocation5 + $0x70] sm:$0xff]  }
  0x2e   :  { %503 = vmatprep.subr.bf16.mxu0 %v1653_v21  ;;  %v1690_v50 = vld [vmem:[#allocation5 + $0x38] sm:$0xff]   ;;  %1567 = vmatprep.subr.bf16.mxu1 %v1689_v49  ;;  %v1692_v52 = vld [vmem:[#allocation5 + $0x30] sm:$0xff]   ;;  %v1693_v53 = vld [vmem:[#allocation5 + $0x68] sm:$0xff]  }
  0x2f   :  { %123 = vperm.xlu1 %1640, %v68_v14   ;;  %118 = vperm.xlu0 %1639, %v67_v15   ;;  %v1694_v54 = vld [vmem:[#allocation5 + $0x28] sm:$0xff]   ;;  %v1695_v55 = vld [vmem:[#allocation5 + $0x60] sm:$0xff]   ;;  %v1697_v57 = vld [vmem:[#allocation5 + $0x58] sm:$0xff]  }
  0x30   :  { %1568 = vmatpush3.bf16.msra.mxu1 %v1690_v50  ;;  %v1696_v56 = vld [vmem:[#allocation5 + $0x20] sm:$0xff]   ;;  %v1698_v58 = vld [vmem:[#allocation5 + $0x18] sm:$0xff]  }
  0x31   :  { %504 = vmatpush1.bf16.msra.mxu0 %v1655_v24  ;;  %1569 = vmatprep.subr.bf16.mxu1 %v1691_v51  ;;  %v75_v63 = vld [vmem:[%s2736_s2] sm:$0x3] }
  0x32   :  { %505 = vmatprep.subr.bf16.mxu0 %v1656_v25  ;;  %v1954_v0 = vrot.slane %v75_v63, %v1946_v61  ;;  %v1957_v1 = vrot.slane %v75_v63, %v1948_v62  ;;  %v199_v2 = vld [vmem:[%s2737_s3] sm:$0x3] }
  0x33   :  { %133 = vperm.xlu1 %1640, %v70_v18   ;;  %128 = vperm.xlu0 %1639, %v69_v19   ;;  %v1963_v3 = vrot.slane %v199_v2, %v1946_v61  ;;  %v1966_v6 = vrot.slane %v199_v2, %v1948_v62 }
  0x34   :  { %1570 = vmatpush3.bf16.msra.mxu1 %v1692_v52 }
  0x35   :  { %506 = vmatpush1.bf16.msra.mxu0 %v1658_v28  ;;  %1571 = vmatprep.subr.bf16.mxu1 %v1693_v53 }
  0x36   :  { %507 = vmatprep.subr.bf16.mxu0 %v1659_v29 }
  0x37   :  { %143 = vperm.xlu1 %1640, %v72_v22   ;;  %138 = vperm.xlu0 %1639, %v71_v23  }
  0x38   :  { %1572 = vmatpush3.bf16.msra.mxu1 %v1694_v54 }
  0x39   :  { %508 = vmatpush1.bf16.msra.mxu0 %v1661_v30  ;;  %1573 = vmatprep.subr.bf16.mxu1 %v1695_v55 }
  0x3a   :  { %509 = vmatprep.subr.bf16.mxu0 %v1662_v31 }
  0x3b   :  { %153 = vperm.xlu1 %1640, %v74_v26   ;;  %148 = vperm.xlu0 %1639, %v73_v27  }
  0x3c   :  { %1574 = vmatpush3.bf16.msra.mxu1 %v1696_v56 }
  0x3d   :  { %510 = vmatpush1.bf16.msra.mxu0 %v1664_v32  ;;  %1575 = vmatprep.subr.bf16.mxu1 %v1697_v57 }
  0x3e   :  { %511 = vmatprep.subr.bf16.mxu0 %v1665_v33 }
  0x40   :  { %1576 = vmatpush3.bf16.msra.mxu1 %v1698_v58 }
  0x41   :  { %512 = vmatpush2.bf16.msra.mxu0 %v1667_v34 }
  0x42   :  { %513 = vmatprep.subr.bf16.mxu0 %v1668_v35 }
  0x45   :  { %514 = vmatpush2.bf16.msra.mxu0 %v1670_v36 }
  0x46   :  { %515 = vmatprep.subr.bf16.mxu0 %v1671_v37 }
  0x49   :  { %516 = vmatpush2.bf16.msra.mxu0 %v1673_v38 }
  0x4a   :  { %517 = vmatprep.subr.bf16.mxu0 %v1674_v39 }
  0x4d   :  { %518 = vmatpush2.bf16.msra.mxu0 %v1676_v40 }
  0x4e   :  { %519 = vmatprep.subr.bf16.mxu0 %v1677_v41 }
  0x51   :  { %520 = vmatpush2.bf16.msra.mxu0 %v1679_v42 }
  0x52   :  { %521 = vmatprep.subr.bf16.mxu0 %v1680_v43 }
  0x55   :  { %522 = vmatpush2.bf16.msra.mxu0 %v1682_v44 }
  0x56   :  { %523 = vmatprep.subr.bf16.mxu0 %v1683_v45 }
  0x59   :  { %524 = vmatpush2.bf16.msra.mxu0 %v1685_v46 }
  0x5a   :  { %525 = vmatprep.subr.bf16.mxu0 %v1686_v47 }
  0x5d   :  { %526 = vmatpush2.bf16.msra.mxu0 %v1688_v48 }
  0x9a   :  { %v89_v4 = vpop.permute.xlu1 %88  ;;  %v79_v5 = vpop.permute.xlu0 %78 }
  0x9b   :  { %v172_v7 = vmul.f32 %v1957_v1, %v89_v4  ;;  %v167_v8 = vmul.f32 %v1954_v0, %v79_v5  ;;  %v168_v9 = vmul.f32 %v1957_v1, %v79_v5  ;;  %v171_v21 = vmul.f32 %v1954_v0, %v89_v4 }
  0x9d   :  { %v216_v10 = vadd.f32 %v1966_v6, %v172_v7  ;;  %v211_v11 = vadd.f32 %v1963_v3, %v167_v8  ;;  %v212_v17 = vadd.f32 %v1966_v6, %v168_v9  ;;  %v215_v36 = vadd.f32 %v1963_v3, %v171_v21 }
  0x9e   :  { %v94_v12 = vpop.permute.xlu1 %93  ;;  %v84_v13 = vpop.permute.xlu0 %83 }
  0x9f   :  { %v174_v14 = vmul.f32 %v1957_v1, %v94_v12  ;;  %v169_v15 = vmul.f32 %v1954_v0, %v84_v13  ;;  %v170_v16 = vmul.f32 %v1957_v1, %v84_v13  ;;  %v248_v24 = vmax.f32 %v216_v10, 0.0 }
  0xa0   :  { %v173_v25 = vmul.f32 %v1954_v0, %v94_v12  ;;  %v244_v27 = vmax.f32 %v212_v17, 0.0  ;;  %v243_v28 = vmax.f32 %v211_v11, 0.0  ;;  %v247_v44 = vmax.f32 %v215_v36, 0.0 }
  0xa1   :  { %v218_v18 = vadd.f32 %v1966_v6, %v174_v14  ;;  %v213_v19 = vadd.f32 %v1963_v3, %v169_v15  ;;  %v214_v20 = vadd.f32 %v1966_v6, %v170_v16 }
  0xa2   :  { %v104_v22 = vpop.permute.xlu1 %103  ;;  %v99_v23 = vpop.permute.xlu0 %98  ;;  %v217_v37 = vadd.f32 %v1963_v3, %v173_v25 }
  0xa3   :  { %v178_v26 = vmul.f32 %v1957_v1, %v104_v22  ;;  %v176_v29 = vmul.f32 %v1957_v1, %v99_v23  ;;  %v246_v30 = vmax.f32 %v214_v20, 0.0  ;;  %v245_v31 = vmax.f32 %v213_v19, 0.0 }
  0xa4   :  { %v250_v32 = vmax.f32 %v218_v18, 0.0  ;;  %v177_v42 = vmul.f32 %v1954_v0, %v104_v22  ;;  %v175_v43 = vmul.f32 %v1954_v0, %v99_v23  ;;  %v249_v45 = vmax.f32 %v217_v37, 0.0 }
  0xa5   :  { %v276_v33 = vpack.c.bf16 %v246_v30, %v244_v27  ;;  %v275_v34 = vpack.c.bf16 %v245_v31, %v243_v28  ;;  %v222_v38 = vadd.f32 %v1966_v6, %v178_v26  ;;  %v220_v39 = vadd.f32 %v1966_v6, %v176_v29 }
  0xa6   :  { %v278_v35 = vpack.c.bf16 %v250_v32, %v248_v24  ;;  %v114_v40 = vpop.permute.xlu1 %113  ;;  %v109_v41 = vpop.permute.xlu0 %108  ;;  %v221_v50 = vadd.f32 %v1963_v3, %v177_v42  ;;  %v219_v51 = vadd.f32 %v1963_v3, %v175_v43  ;;  %v277_v52 = vpack.c.bf16 %v249_v45, %v247_v44 }
  0xa7   :  { %527 = vmatprep.mubr.bf16.mxu0 %v276_v33  ;;  %v182_v46 = vmul.f32 %v1957_v1, %v114_v40  ;;  %v180_v47 = vmul.f32 %v1957_v1, %v109_v41  ;;  %v252_v48 = vmax.f32 %v220_v39, 0.0  ;;  %v254_v49 = vmax.f32 %v222_v38, 0.0 }
  0xa8   :  { %528 = vmatmul.mubr.bf16.vlgmr.msra.gmra.mxu0 %v275_v34  ;;  %v181_v58 = vmul.f32 %v1954_v0, %v114_v40  ;;  %v179_v60 = vmul.f32 %v1954_v0, %v109_v41  ;;  %v251_v63 = vmax.f32 %v219_v51, 0.0  ;;  %v253_v2 = vmax.f32 %v221_v50, 0.0 }
  0xa9   :  { %537 = vmatprep.mubr.bf16.mxu0 %v278_v35  ;;  %v226_v53 = vadd.f32 %v1966_v6, %v182_v46  ;;  %v224_v54 = vadd.f32 %v1966_v6, %v180_v47  ;;  %v280_v55 = vpack.c.bf16 %v254_v49, %v252_v48 }
  0xaa   :  { %v124_v56 = vpop.permute.xlu1 %123  ;;  %v119_v57 = vpop.permute.xlu0 %118  ;;  %v225_v9 = vadd.f32 %v1963_v3, %v181_v58  ;;  %v223_v10 = vadd.f32 %v1963_v3, %v179_v60  ;;  %v279_v11 = vpack.c.bf16 %v253_v2, %v251_v63 }
  0xab   :  { %v186_v4 = vmul.f32 %v1957_v1, %v124_v56  ;;  %v184_v5 = vmul.f32 %v1957_v1, %v119_v57  ;;  %v256_v7 = vmax.f32 %v224_v54, 0.0  ;;  %v258_v8 = vmax.f32 %v226_v53, 0.0 }
  0xac   :  { %v185_v17 = vmul.f32 %v1954_v0, %v124_v56  ;;  %v183_v18 = vmul.f32 %v1954_v0, %v119_v57  ;;  %v255_v19 = vmax.f32 %v223_v10, 0.0  ;;  %v257_v20 = vmax.f32 %v225_v9, 0.0 }
  0xad   :  { %v230_v12 = vadd.f32 %v1966_v6, %v186_v4  ;;  %v228_v13 = vadd.f32 %v1966_v6, %v184_v5  ;;  %v282_v14 = vpack.c.bf16 %v258_v8, %v256_v7 }
  0xae   :  { %v134_v15 = vpop.permute.xlu1 %133  ;;  %v129_v16 = vpop.permute.xlu0 %128  ;;  %v229_v25 = vadd.f32 %v1963_v3, %v185_v17  ;;  %v227_v26 = vadd.f32 %v1963_v3, %v183_v18  ;;  %v281_v27 = vpack.c.bf16 %v257_v20, %v255_v19  ;;  %v1699_v17 = vld [vmem:[#allocation5 + $0x50] sm:$0xff]   ;;  %v1702_v19 = vld [vmem:[#allocation5 + $0x8] sm:$0xff]   ;;  %v1703_v20 = vld [vmem:[#allocation5 + $0x40] sm:$0xff]  }
  0xaf   :  { %v190_v21 = vmul.f32 %v1957_v1, %v134_v15  ;;  %v188_v22 = vmul.f32 %v1957_v1, %v129_v16  ;;  %v260_v23 = vmax.f32 %v228_v13, 0.0  ;;  %v262_v24 = vmax.f32 %v230_v12, 0.0  ;;  %v1700_v18 = vld [vmem:[#allocation5 + $0x10] sm:$0xff]   ;;  %1577 = vmatprep.subr.bf16.mxu1 %v1699_v17 }
  0xb0   :  { %538 = vmatmul.mubr.bf16.gmra.mxu0 %v277_v52  ;;  %v189_v33 = vmul.f32 %v1954_v0, %v134_v15  ;;  %v187_v34 = vmul.f32 %v1954_v0, %v129_v16  ;;  %v259_v35 = vmax.f32 %v227_v26, 0.0  ;;  %v261_v36 = vmax.f32 %v229_v25, 0.0  ;;  %1578 = vmatpush3.bf16.msra.mxu1 %v1700_v18 }
  0xb1   :  { %547 = vmatprep.mubr.bf16.mxu0 %v280_v55  ;;  %v234_v28 = vadd.f32 %v1966_v6, %v190_v21  ;;  %v232_v29 = vadd.f32 %v1966_v6, %v188_v22  ;;  %v284_v30 = vpack.c.bf16 %v262_v24, %v260_v23  ;;  %v1704_v21 = vld [vmem:[#allocation5] sm:$0xff]  }
  0xb2   :  { %v144_v31 = vpop.permute.xlu1 %143  ;;  %v139_v32 = vpop.permute.xlu0 %138  ;;  %v233_v41 = vadd.f32 %v1963_v3, %v189_v33  ;;  %v231_v42 = vadd.f32 %v1963_v3, %v187_v34  ;;  %v283_v43 = vpack.c.bf16 %v261_v36, %v259_v35 }
  0xb3   :  { %v194_v37 = vmul.f32 %v1957_v1, %v144_v31  ;;  %v192_v38 = vmul.f32 %v1957_v1, %v139_v32  ;;  %v264_v39 = vmax.f32 %v232_v29, 0.0  ;;  %v266_v40 = vmax.f32 %v234_v28, 0.0 }
  0xb4   :  { %v193_v49 = vmul.f32 %v1954_v0, %v144_v31  ;;  %v191_v50 = vmul.f32 %v1954_v0, %v139_v32  ;;  %v263_v51 = vmax.f32 %v231_v42, 0.0  ;;  %v265_v52 = vmax.f32 %v233_v41, 0.0 }
  0xb5   :  { %v238_v44 = vadd.f32 %v1966_v6, %v194_v37  ;;  %v236_v45 = vadd.f32 %v1966_v6, %v192_v38  ;;  %v286_v46 = vpack.c.bf16 %v266_v40, %v264_v39 }
  0xb6   :  { %v154_v47 = vpop.permute.xlu1 %153  ;;  %v149_v48 = vpop.permute.xlu0 %148  ;;  %v237_v57 = vadd.f32 %v1963_v3, %v193_v49  ;;  %v235_v58 = vadd.f32 %v1963_v3, %v191_v50  ;;  %v285_v60 = vpack.c.bf16 %v265_v52, %v263_v51 }
  0xb7   :  { %v270_v53 = vmax.f32 %v238_v44, 0.0  ;;  %v198_v54 = vmul.f32 %v1957_v1, %v154_v47  ;;  %v196_v55 = vmul.f32 %v1957_v1, %v149_v48  ;;  %v268_v56 = vmax.f32 %v236_v45, 0.0 }
  0xb8   :  { %548 = vmatmul.mubr.bf16.gmra.mxu0 %v279_v11  ;;  %v269_v5 = vmax.f32 %v237_v57, 0.0  ;;  %v197_v7 = vmul.f32 %v1954_v0, %v154_v47  ;;  %v195_v8 = vmul.f32 %v1954_v0, %v149_v48  ;;  %v267_v9 = vmax.f32 %v235_v58, 0.0  ;;  %v1701_v0 = vld [vmem:[#allocation5 + $0x48] sm:$0xff]  }
  0xb9   :  { %557 = vmatprep.mubr.bf16.mxu0 %v282_v14  ;;  %v242_v63 = vadd.f32 %v1966_v6, %v198_v54  ;;  %v240_v2 = vadd.f32 %v1966_v6, %v196_v55  ;;  %v288_v4 = vpack.c.bf16 %v270_v53, %v268_v56  ;;  %1579 = vmatprep.subr.bf16.mxu1 %v1701_v0 }
  0xba   :  { %v241_v11 = vadd.f32 %v1963_v3, %v197_v7  ;;  %v239_v12 = vadd.f32 %v1963_v3, %v195_v8  ;;  %v287_v13 = vpack.c.bf16 %v269_v5, %v267_v9  ;;  %1580 = vmatpush3.bf16.msra.mxu1 %v1702_v19  ;;  %v323_v3 = vld [vmem:[%s2739_s5] sm:$0x3] }
  0xbb   :  { %v274_v1 = vmax.f32 %v242_v63, 0.0  ;;  %v272_v10 = vmax.f32 %v240_v2, 0.0  ;;  %1581 = vmatprep.subr.bf16.mxu1 %v1703_v20  ;;  %v2036_v23 = vrot.slane %v323_v3, %v1948_v62  ;;  %v2039_v24 = vrot.slane %v323_v3, %v1946_v61 }
  0xbc   :  { %v273_v6 = vmax.f32 %v241_v11, 0.0  ;;  %v271_v15 = vmax.f32 %v239_v12, 0.0 }
  0xbd   :  { %v290_v14 = vpack.c.bf16 %v274_v1, %v272_v10 }
  0xbe   :  { %v289_v16 = vpack.c.bf16 %v273_v6, %v271_v15  ;;  %1582 = vmatpush3.bf16.msra.mxu1 %v1704_v21 }
  0xc0   :  { %558 = vmatmul.mubr.bf16.gmra.mxu0 %v281_v27 }
  0xc1   :  { %567 = vmatprep.mubr.bf16.mxu0 %v284_v30 }
  0xc8   :  { %568 = vmatmul.mubr.bf16.gmra.mxu0 %v283_v43 }
  0xc9   :  { %577 = vmatprep.mubr.bf16.mxu0 %v286_v46 }
  0xd0   :  { %578 = vmatmul.mubr.bf16.gmra.mxu0 %v285_v60 }
  0xd1   :  { %587 = vmatprep.mubr.bf16.mxu0 %v288_v4 }
  0xd8   :  { %588 = vmatmul.mubr.bf16.gmra.mxu0 %v287_v13 }
  0xd9   :  { %597 = vmatprep.mubr.bf16.mxu0 %v290_v14 }
  0xe0   :  { %598 = vmatmul.mubr.bf16.gmra.mxu0 %v289_v16 }
 0x168   :  { %v529_v22 = vpop.f32.mrf.mxu0 }
 0x169   :  { %v530_v29 = vadd.f32 %v529_v22, %v2039_v24 }
 0x16a   :  { %v531_v25 = vpop.f32.mrf.mxu0 }
 0x16b   :  { %v532_v27 = vadd.f32 %v531_v25, %v2036_v23  ;;  %v608_v62 = vmax.f32 %v530_v29, 0.0 }
 0x16c   :  { %v533_v26 = vpop.f32.mrf.mxu0 }
 0x16d   :  { %v534_v28 = vadd.f32 %v533_v26, %v2039_v24  ;;  %v609_v34 = vmax.f32 %v532_v27, 0.0 }
 0x16e   :  { %v535_v30 = vpop.f32.mrf.mxu0 }
 0x16f   :  { %v536_v31 = vadd.f32 %v535_v30, %v2036_v23  ;;  %v610_v32 = vmax.f32 %v534_v28, 0.0 }
 0x170   :  { %v539_v33 = vpop.f32.mrf.mxu0 }
 0x171   :  { %v611_v35 = vmax.f32 %v536_v31, 0.0  ;;  %v640_v61 = vpack.c.bf16 %v610_v32, %v608_v62  ;;  %v540_v41 = vadd.f32 %v539_v33, %v2039_v24 }
 0x172   :  { %v541_v36 = vpop.f32.mrf.mxu0 }
 0x173   :  { %v641_v37 = vpack.c.bf16 %v611_v35, %v609_v34  ;;  %v542_v39 = vadd.f32 %v541_v36, %v2036_v23  ;;  %v612_v48 = vmax.f32 %v540_v41, 0.0 }
 0x174   :  { %v543_v38 = vpop.f32.mrf.mxu0 }
 0x175   :  { %v544_v40 = vadd.f32 %v543_v38, %v2039_v24  ;;  %823 = vmatprep.mubr.bf16.mxu1 %v641_v37  ;;  %v613_v46 = vmax.f32 %v542_v39, 0.0 }
 0x176   :  { %v545_v42 = vpop.f32.mrf.mxu0  ;;  %824 = vmatmul.mubr.bf16.vlgmr.msra.gmra.mxu1 %v640_v61 }
 0x177   :  { %v546_v43 = vadd.f32 %v545_v42, %v2036_v23  ;;  %v614_v44 = vmax.f32 %v544_v40, 0.0 }
 0x178   :  { %v549_v45 = vpop.f32.mrf.mxu0 }
 0x179   :  { %v615_v47 = vmax.f32 %v546_v43, 0.0  ;;  %v642_v51 = vpack.c.bf16 %v614_v44, %v612_v48  ;;  %v550_v55 = vadd.f32 %v549_v45, %v2039_v24 }
 0x17a   :  { %v551_v49 = vpop.f32.mrf.mxu0 }
 0x17b   :  { %v643_v50 = vpack.c.bf16 %v615_v47, %v613_v46  ;;  %v552_v53 = vadd.f32 %v551_v49, %v2036_v23  ;;  %v616_v4 = vmax.f32 %v550_v55, 0.0 }
 0x17c   :  { %v553_v52 = vpop.f32.mrf.mxu0 }
 0x17d   :  { %v554_v54 = vadd.f32 %v553_v52, %v2039_v24  ;;  %831 = vmatprep.mubr.bf16.mxu1 %v643_v50  ;;  %v617_v63 = vmax.f32 %v552_v53, 0.0 }
 0x17e   :  { %v555_v56 = vpop.f32.mrf.mxu0  ;;  %832 = vmatmul.mubr.bf16.gmra.mxu1 %v642_v51 }
 0x17f   :  { %v556_v57 = vadd.f32 %v555_v56, %v2036_v23  ;;  %v618_v58 = vmax.f32 %v554_v54, 0.0 }
 0x180   :  { %v559_v60 = vpop.f32.mrf.mxu0 }
 0x181   :  { %v619_v2 = vmax.f32 %v556_v57, 0.0  ;;  %v644_v8 = vpack.c.bf16 %v618_v58, %v616_v4  ;;  %v560_v11 = vadd.f32 %v559_v60, %v2039_v24 }
 0x182   :  { %v561_v5 = vpop.f32.mrf.mxu0 }
 0x183   :  { %v645_v7 = vpack.c.bf16 %v619_v2, %v617_v63  ;;  %v562_v1 = vadd.f32 %v561_v5, %v2036_v23  ;;  %v620_v17 = vmax.f32 %v560_v11, 0.0 }
 0x184   :  { %v563_v9 = vpop.f32.mrf.mxu0 }
 0x185   :  { %v564_v10 = vadd.f32 %v563_v9, %v2039_v24  ;;  %839 = vmatprep.mubr.bf16.mxu1 %v645_v7  ;;  %v621_v15 = vmax.f32 %v562_v1, 0.0 }
 0x186   :  { %v565_v12 = vpop.f32.mrf.mxu0  ;;  %840 = vmatmul.mubr.bf16.gmra.mxu1 %v644_v8 }
 0x187   :  { %v566_v13 = vadd.f32 %v565_v12, %v2036_v23  ;;  %v622_v14 = vmax.f32 %v564_v10, 0.0 }
 0x188   :  { %v569_v6 = vpop.f32.mrf.mxu0 }
 0x189   :  { %v623_v16 = vmax.f32 %v566_v13, 0.0  ;;  %v646_v19 = vpack.c.bf16 %v622_v14, %v620_v17  ;;  %v570_v22 = vadd.f32 %v569_v6, %v2039_v24 }
 0x18a   :  { %v571_v18 = vpop.f32.mrf.mxu0 }
 0x18b   :  { %v647_v0 = vpack.c.bf16 %v623_v16, %v621_v15  ;;  %v572_v21 = vadd.f32 %v571_v18, %v2036_v23  ;;  %v624_v31 = vmax.f32 %v570_v22, 0.0  ;;  %v2076_v15 = vld [vmem:[%s2741_s7] ss:$0 sm:$0xff] }
 0x18c   :  { %v573_v20 = vpop.f32.mrf.mxu0 }
 0x18d   :  { %v574_v3 = vadd.f32 %v573_v20, %v2039_v24  ;;  %847 = vmatprep.mubr.bf16.mxu1 %v647_v0  ;;  %v625_v29 = vmax.f32 %v572_v21, 0.0 }
 0x18e   :  { %v575_v25 = vpop.f32.mrf.mxu0  ;;  %848 = vmatmul.mubr.bf16.gmra.mxu1 %v646_v19 }
 0x18f   :  { %v576_v26 = vadd.f32 %v575_v25, %v2036_v23  ;;  %v626_v27 = vmax.f32 %v574_v3, 0.0  ;;  %v1049_v3 = vld [vmem:[%s2735_s1 + $0x8] sm:$0xff] }
 0x190   :  { %v579_v28 = vpop.f32.mrf.mxu0 }
 0x191   :  { %v627_v30 = vmax.f32 %v576_v26, 0.0  ;;  %v648_v34 = vpack.c.bf16 %v626_v27, %v624_v31  ;;  %v580_v37 = vadd.f32 %v579_v28, %v2039_v24 }
 0x192   :  { %v581_v32 = vpop.f32.mrf.mxu0 }
 0x193   :  { %v649_v33 = vpack.c.bf16 %v627_v30, %v625_v29  ;;  %v582_v62 = vadd.f32 %v581_v32, %v2036_v23  ;;  %v628_v43 = vmax.f32 %v580_v37, 0.0  ;;  %v1050_v29 = vld [vmem:[%s2735_s1 + $0x10] sm:$0xff] }
 0x194   :  { %v583_v35 = vpop.f32.mrf.mxu0 }
 0x195   :  { %v584_v36 = vadd.f32 %v583_v35, %v2039_v24  ;;  %855 = vmatprep.mubr.bf16.mxu1 %v649_v33  ;;  %v629_v41 = vmax.f32 %v582_v62, 0.0  ;;  %v1051_v35 = vld [vmem:[%s2735_s1 + $0x18] sm:$0xff] }
 0x196   :  { %v585_v61 = vpop.f32.mrf.mxu0  ;;  %856 = vmatmul.mubr.bf16.gmra.mxu1 %v648_v34 }
 0x197   :  { %v586_v38 = vadd.f32 %v585_v61, %v2036_v23  ;;  %v630_v39 = vmax.f32 %v584_v36, 0.0 }
 0x198   :  { %v589_v40 = vpop.f32.mrf.mxu0 }
 0x199   :  { %v631_v42 = vmax.f32 %v586_v38, 0.0  ;;  %v650_v46 = vpack.c.bf16 %v630_v39, %v628_v43  ;;  %v590_v50 = vadd.f32 %v589_v40, %v2039_v24  ;;  %v1052_v39 = vld [vmem:[%s2735_s1 + $0x20] sm:$0xff] }
 0x19a   :  { %v591_v44 = vpop.f32.mrf.mxu0 }
 0x19b   :  { %v651_v45 = vpack.c.bf16 %v631_v42, %v629_v41  ;;  %v592_v48 = vadd.f32 %v591_v44, %v2036_v23  ;;  %v632_v57 = vmax.f32 %v590_v50, 0.0 }
 0x19c   :  { %v593_v47 = vpop.f32.mrf.mxu0 }
 0x19d   :  { %v594_v49 = vadd.f32 %v593_v47, %v2039_v24  ;;  %863 = vmatprep.mubr.bf16.mxu1 %v651_v45  ;;  %v633_v55 = vmax.f32 %v592_v48, 0.0  ;;  %v1053_v45 = vld [vmem:[%s2735_s1 + $0x28] sm:$0xff] }
 0x19e   :  { %v595_v51 = vpop.f32.mrf.mxu0  ;;  %864 = vmatmul.mubr.bf16.gmra.mxu1 %v650_v46 }
 0x19f   :  { %v596_v52 = vadd.f32 %v595_v51, %v2036_v23  ;;  %v634_v53 = vmax.f32 %v594_v49, 0.0  ;;  %v1054_v51 = vld [vmem:[%s2735_s1 + $0x30] sm:$0xff] }
 0x1a0   :  { %v599_v54 = vpop.f32.mrf.mxu0 }
 0x1a1   :  { %v635_v56 = vmax.f32 %v596_v52, 0.0  ;;  %v652_v63 = vpack.c.bf16 %v634_v53, %v632_v57  ;;  %v600_v7 = vadd.f32 %v599_v54, %v2039_v24  ;;  %v1055_v57 = vld [vmem:[%s2735_s1 + $0x38] sm:$0xff] }
 0x1a2   :  { %v601_v58 = vpop.f32.mrf.mxu0 }
 0x1a3   :  { %v653_v60 = vpack.c.bf16 %v635_v56, %v633_v55  ;;  %v602_v4 = vadd.f32 %v601_v58, %v2036_v23  ;;  %v636_v12 = vmax.f32 %v600_v7, 0.0 }
 0x1a4   :  { %v603_v2 = vpop.f32.mrf.mxu0 }
 0x1a5   :  { %v604_v5 = vadd.f32 %v603_v2, %v2039_v24  ;;  %871 = vmatprep.mubr.bf16.mxu1 %v653_v60  ;;  %v637_v10 = vmax.f32 %v602_v4, 0.0 }
 0x1a6   :  { %v605_v8 = vpop.f32.mrf.mxu0  ;;  %872 = vmatmul.mubr.bf16.gmra.mxu1 %v652_v63 }
 0x1a7   :  { %v606_v9 = vadd.f32 %v605_v8, %v2036_v23  ;;  %v638_v1 = vmax.f32 %v604_v5, 0.0  ;;  %v1048_v23 = vld [vmem:[%s2735_s1] sm:$0xff] }
 0x1a8   :  { %v1056_v5 = vld [vmem:[%s2735_s1 + $0x40] sm:$0xff] }
 0x1a9   :  { %v639_v11 = vmax.f32 %v606_v9, 0.0  ;;  %v654_v14 = vpack.c.bf16 %v638_v1, %v636_v12 }
 0x1ab   :  { %v655_v13 = vpack.c.bf16 %v639_v11, %v637_v10  ;;  %v1057_v11 = vld [vmem:[%s2735_s1 + $0x48] sm:$0xff] }
 0x1ad   :  { %879 = vmatprep.mubr.bf16.mxu1 %v655_v13 }
 0x1ae   :  { %880 = vmatmul.mubr.bf16.gmra.mxu1 %v654_v14 }
 0x236   :  { %v1583_v6 = vpop.f32.mrf.mxu1 }
 0x238   :  { %v1584_v16 = vpop.f32.mrf.mxu1 }
 0x239   :  { %v1585_v24 = vadd.f32 %v1584_v16, %v1583_v6 }
 0x23a   :  { %v1586_v17 = vpop.f32.mrf.mxu1 }
 0x23b   :  { %v2082_v18 = vadd.f32 %v1585_v24, %v2076_v15  ;;  %v1058_v24 = vld [vmem:[%s2735_s1 + $0x50] sm:$0xff] }
 0x23c   :  { %v1587_v0 = vpop.f32.mrf.mxu1 }
 0x23d   :  { %v1588_v19 = vadd.f32 %v1587_v0, %v1586_v17  ;;  %v2085_v20 = vadd.f32 %v1048_v23, %v2082_v18 }
 0x23e   :  { %v1589_v21 = vpop.f32.mrf.mxu1 }
 0x23f   :  { %v2091_v22 = vadd.f32 %v1588_v19, %v2076_v15  ;;  %1080 = vmax.xlane.f32.xlu0 %v2085_v20 }
 0x240   :  { %v1590_v25 = vpop.f32.mrf.mxu1 }
 0x241   :  { %v1591_v26 = vadd.f32 %v1590_v25, %v1589_v21  ;;  %v2095_v27 = vadd.f32 %v1049_v3, %v2091_v22  ;;  %v1059_v3 = vld [vmem:[%s2735_s1 + $0x58] sm:$0xff] }
 0x242   :  { %v1592_v28 = vpop.f32.mrf.mxu1 }
 0x243   :  { %v2101_v30 = vadd.f32 %v1591_v26, %v2076_v15  ;;  %1082 = vmax.xlane.f32.xlu1 %v2095_v27 }
 0x244   :  { %v1593_v31 = vpop.f32.mrf.mxu1 }
 0x245   :  { %v1594_v32 = vadd.f32 %v1593_v31, %v1592_v28  ;;  %v2105_v33 = vadd.f32 %v1050_v29, %v2101_v30 }
 0x246   :  { %v1595_v34 = vpop.f32.mrf.mxu1 }
 0x247   :  { %v2111_v62 = vadd.f32 %v1594_v32, %v2076_v15  ;;  %1084 = vmax.xlane.f32.xlu0 %v2105_v33  ;;  %v1060_v32 = vld [vmem:[%s2735_s1 + $0x60] sm:$0xff] }
 0x248   :  { %v1596_v36 = vpop.f32.mrf.mxu1 }
 0x249   :  { %v1597_v37 = vadd.f32 %v1596_v36, %v1595_v34  ;;  %v2115_v61 = vadd.f32 %v1051_v35, %v2111_v62 }
 0x24a   :  { %v1598_v38 = vpop.f32.mrf.mxu1 }
 0x24b   :  { %v2121_v40 = vadd.f32 %v1597_v37, %v2076_v15  ;;  %1086 = vmax.xlane.f32.xlu0 %v2115_v61 }
 0x24c   :  { %v1599_v41 = vpop.f32.mrf.mxu1 }
 0x24d   :  { %v1600_v42 = vadd.f32 %v1599_v41, %v1598_v38  ;;  %v2125_v43 = vadd.f32 %v1052_v39, %v2121_v40  ;;  %v1061_v39 = vld [vmem:[%s2735_s1 + $0x68] sm:$0xff] }
 0x24e   :  { %v1601_v44 = vpop.f32.mrf.mxu1 }
 0x24f   :  { %v2131_v46 = vadd.f32 %v1600_v42, %v2076_v15  ;;  %1088 = vmax.xlane.f32.xlu1 %v2125_v43 }
 0x250   :  { %v1602_v47 = vpop.f32.mrf.mxu1 }
 0x251   :  { %v1603_v48 = vadd.f32 %v1602_v47, %v1601_v44  ;;  %v2135_v49 = vadd.f32 %v1053_v45, %v2131_v46 }
 0x252   :  { %v1604_v50 = vpop.f32.mrf.mxu1 }
 0x253   :  { %v2141_v52 = vadd.f32 %v1603_v48, %v2076_v15  ;;  %1090 = vmax.xlane.f32.xlu0 %v2135_v49  ;;  %v1062_v48 = vld [vmem:[%s2735_s1 + $0x70] sm:$0xff] }
 0x254   :  { %v1605_v53 = vpop.f32.mrf.mxu1 }
 0x255   :  { %v1606_v54 = vadd.f32 %v1605_v53, %v1604_v50  ;;  %v2145_v55 = vadd.f32 %v1054_v51, %v2141_v52 }
 0x256   :  { %v1607_v56 = vpop.f32.mrf.mxu1 }
 0x257   :  { %v2151_v58 = vadd.f32 %v1606_v54, %v2076_v15  ;;  %1092 = vmax.xlane.f32.xlu1 %v2145_v55 }
 0x258   :  { %v1608_v60 = vpop.f32.mrf.mxu1 }
 0x259   :  { %v1609_v63 = vadd.f32 %v1608_v60, %v1607_v56  ;;  %v2155_v2 = vadd.f32 %v1055_v57, %v2151_v58  ;;  %v1063_v56 = vld [vmem:[%s2735_s1 + $0x78] sm:$0xff]  ;;  %s1842_s1 = smov [#allocation7]  }
 0x25a   :  { %v1610_v4 = vpop.f32.mrf.mxu1  ;;  %s1505_s15 = sshll.u32 %s1842_s1, 4  ;;  %s1506_s15 = int_to_ptr.vmem [resolvable:$true] %s1505_s15 }
 0x25b   :  { %v2161_v7 = vadd.f32 %v1609_v63, %v2076_v15  ;;  %1094 = vmax.xlane.f32.xlu0 %v2155_v2  ;;  %s1809_s16 = scalar_lea.vmem %s1506_s15, 2048  ;;  %p1814_p11 = scmp.lt.s32.totalorder %s1506_s15, %s1506_s15 }
 0x25c   :  { %v1611_v8 = vpop.f32.mrf.mxu1  ;;  %p1810_p10 = scmp.ne.s32.totalorder %s1506_s15, %s1809_s16  ;;  %p1815_p12 = scmp.lt.s32.totalorder %s1809_s16, %s1809_s16 }
 0x25d   :  { %v1612_v9 = vadd.f32 %v1611_v8, %v1610_v4  ;;  %v2165_v1 = vadd.f32 %v1056_v5, %v2161_v7 }
 0x25e   :  { %v1613_v10 = vpop.f32.mrf.mxu1  ;;  %p1816_p13 = por %p1815_p12, %p1814_p11 }
 0x25f   :  { %v2171_v12 = vadd.f32 %v1612_v9, %v2076_v15  ;;  %1096 = vmax.xlane.f32.xlu1 %v2165_v1 }
 0x260   :  { %v1614_v13 = vpop.f32.mrf.mxu1  ;;  %p1817_p0 = pnand %p1816_p13, %p1810_p10 }
 0x261   :  { %v1615_v14 = vadd.f32 %v1614_v13, %v1613_v10  ;;  %v2175_v6 = vadd.f32 %v1057_v11, %v2171_v12 }
 0x262   :  { %v1616_v16 = vpop.f32.mrf.mxu1 }
 0x263   :  { %v2181_v17 = vadd.f32 %v1615_v14, %v2076_v15  ;;  %1098 = vmax.xlane.f32.xlu0 %v2175_v6 }
 0x264   :  { %v1617_v23 = vpop.f32.mrf.mxu1 }
 0x265   :  { %v1618_v0 = vadd.f32 %v1617_v23, %v1616_v16  ;;  %v2185_v19 = vadd.f32 %v1058_v24, %v2181_v17 }
 0x266   :  { %v1619_v21 = vpop.f32.mrf.mxu1 }
 0x267   :  { %v2191_v25 = vadd.f32 %v1618_v0, %v2076_v15  ;;  %1100 = vmax.xlane.f32.xlu1 %v2185_v19 }
 0x268   :  { %v1620_v26 = vpop.f32.mrf.mxu1 }
 0x269   :  { %v1621_v28 = vadd.f32 %v1620_v26, %v1619_v21  ;;  %v2195_v29 = vadd.f32 %v1059_v3, %v2191_v25 }
 0x26a   :  { %v1622_v31 = vpop.f32.mrf.mxu1 }
 0x26b   :  { %v2201_v34 = vadd.f32 %v1621_v28, %v2076_v15  ;;  %1102 = vmax.xlane.f32.xlu0 %v2195_v29 }
 0x26c   :  { %v1623_v35 = vpop.f32.mrf.mxu1 }
 0x26d   :  { %v1624_v36 = vadd.f32 %v1623_v35, %v1622_v31  ;;  %v2205_v37 = vadd.f32 %v1060_v32, %v2201_v34 }
 0x26e   :  { %v1625_v38 = vpop.f32.mrf.mxu1 }
 0x26f   :  { %v2211_v41 = vadd.f32 %v1624_v36, %v2076_v15  ;;  %1104 = vmax.xlane.f32.xlu1 %v2205_v37 }
 0x270   :  { %v1626_v42 = vpop.f32.mrf.mxu1 }
 0x271   :  { %v1627_v44 = vadd.f32 %v1626_v42, %v1625_v38  ;;  %v2215_v45 = vadd.f32 %v1061_v39, %v2211_v41 }
 0x272   :  { %v1628_v47 = vpop.f32.mrf.mxu1 }
 0x273   :  { %v2221_v50 = vadd.f32 %v1627_v44, %v2076_v15  ;;  %1106 = vmax.xlane.f32.xlu0 %v2215_v45 }
 0x274   :  { %v1629_v51 = vpop.f32.mrf.mxu1 }
 0x275   :  { %v1630_v53 = vadd.f32 %v1629_v51, %v1628_v47  ;;  %v2225_v54 = vadd.f32 %v1062_v48, %v2221_v50 }
 0x277   :  { %v2231_v57 = vadd.f32 %v1630_v53, %v2076_v15  ;;  %1108 = vmax.xlane.f32.xlu1 %v2225_v54  ;;  %v2255_v15 = vand.u32 127, %v157_v59 }
 0x279   :  { %v2235_v60 = vadd.f32 %v1063_v56, %v2231_v57 }
 0x27b   :  { %1110 = vmax.xlane.f32.xlu0 %v2235_v60  ;;  %888 = vmax.xlane.f32.xlu1 %v2082_v18 }
 0x27f   :  { %890 = vmax.xlane.f32.xlu0 %v2091_v22  ;;  %892 = vmax.xlane.f32.xlu1 %v2101_v30 }
 0x283   :  { %894 = vmax.xlane.f32.xlu0 %v2111_v62  ;;  %896 = vmax.xlane.f32.xlu1 %v2121_v40 }
 0x287   :  { %898 = vmax.xlane.f32.xlu0 %v2131_v46  ;;  %900 = vmax.xlane.f32.xlu1 %v2141_v52 }
 0x28b   :  { %902 = vmax.xlane.f32.xlu0 %v2151_v58  ;;  %904 = vmax.xlane.f32.xlu1 %v2161_v7 }
 0x28f   :  { %906 = vmax.xlane.f32.xlu0 %v2171_v12  ;;  %908 = vmax.xlane.f32.xlu1 %v2181_v17 }
 0x293   :  { %910 = vmax.xlane.f32.xlu0 %v2191_v25  ;;  %912 = vmax.xlane.f32.xlu1 %v2201_v34 }
 0x297   :  { %914 = vmax.xlane.f32.xlu0 %v2211_v41  ;;  %916 = vmax.xlane.f32.xlu1 %v2221_v50 }
 0x29b   :  { %918 = vmax.xlane.f32.xlu0 %v2231_v57 }
 0x2c8   :  { %v1081_v63 = vpop.xlane.xlu0 %1080 }
 0x2c9   :  { %vm1114_vm0 = vcmp.ge.f32.partialorder %v2085_v20, %v1081_v63 }
 0x2ca   :  { %v2259_v4 = vsel %vm1114_vm0, %v2255_v15, 128 }
 0x2cb   :  { %v1147_v5 = vshra.s32 %v2259_v4, 16 }
 0x2cc   :  { %v1083_v8 = vpop.xlane.xlu1 %1082 }
 0x2cd   :  { %vm1115_vm1 = vcmp.ge.f32.partialorder %v2095_v27, %v1083_v8  ;;  %v2263_v9 = vcvt.s32.f32 %v1147_v5 }
 0x2ce   :  { %v2266_v10 = vsel %vm1115_vm1, %v2255_v15, 128 }
 0x2cf   :  { %1150 = vmin.xlane.f32.xlu1 %v2263_v9  ;;  %v1161_v59 = vshra.s32 %v2266_v10, 16 }
 0x2d0   :  { %v1085_v11 = vpop.xlane.xlu0 %1084 }
 0x2d1   :  { %vm1116_vm2 = vcmp.ge.f32.partialorder %v2105_v33, %v1085_v11  ;;  %v2271_v20 = vcvt.s32.f32 %v1161_v59 }
 0x2d2   :  { %v2274_v13 = vsel %vm1116_vm2, %v2255_v15, 128 }
 0x2d3   :  { %1164 = vmin.xlane.f32.xlu0 %v2271_v20  ;;  %v1175_v27 = vshra.s32 %v2274_v13, 16 }
 0x2d4   :  { %v1087_v14 = vpop.xlane.xlu0 %1086 }
 0x2d5   :  { %vm1117_vm3 = vcmp.ge.f32.partialorder %v2115_v61, %v1087_v14  ;;  %v2279_v16 = vcvt.s32.f32 %v1175_v27 }
 0x2d6   :  { %v2282_v24 = vsel %vm1117_vm3, %v2255_v15, 128 }
 0x2d7   :  { %1178 = vmin.xlane.f32.xlu1 %v2279_v16  ;;  %v1189_v33 = vshra.s32 %v2282_v24, 16 }
 0x2d8   :  { %v1089_v23 = vpop.xlane.xlu1 %1088 }
 0x2d9   :  { %vm1118_vm4 = vcmp.ge.f32.partialorder %v2125_v43, %v1089_v23  ;;  %v2287_v0 = vcvt.s32.f32 %v1189_v33 }
 0x2da   :  { %v2290_v21 = vsel %vm1118_vm4, %v2255_v15, 128 }
 0x2db   :  { %1192 = vmin.xlane.f32.xlu0 %v2287_v0  ;;  %v1203_v61 = vshra.s32 %v2290_v21, 16 }
 0x2dc   :  { %v1091_v3 = vpop.xlane.xlu0 %1090 }
 0x2dd   :  { %vm1119_vm5 = vcmp.ge.f32.partialorder %v2135_v49, %v1091_v3  ;;  %v2295_v26 = vcvt.s32.f32 %v1203_v61 }
 0x2de   :  { %v2298_v28 = vsel %vm1119_vm5, %v2255_v15, 128 }
 0x2df   :  { %1206 = vmin.xlane.f32.xlu1 %v2295_v26  ;;  %v1217_v43 = vshra.s32 %v2298_v28, 16 }
 0x2e0   :  { %v1093_v31 = vpop.xlane.xlu1 %1092 }
 0x2e1   :  { %vm1120_vm6 = vcmp.ge.f32.partialorder %v2145_v55, %v1093_v31  ;;  %v2303_v32 = vcvt.s32.f32 %v1217_v43 }
 0x2e2   :  { %v2306_v35 = vsel %vm1120_vm6, %v2255_v15, 128 }
 0x2e3   :  { %1220 = vmin.xlane.f32.xlu0 %v2303_v32  ;;  %v1231_v49 = vshra.s32 %v2306_v35, 16 }
 0x2e4   :  { %v1095_v36 = vpop.xlane.xlu0 %1094 }
 0x2e5   :  { %vm1121_vm7 = vcmp.ge.f32.partialorder %v2155_v2, %v1095_v36  ;;  %v2311_v38 = vcvt.s32.f32 %v1231_v49 }
 0x2e6   :  { %v2314_v39 = vsel %vm1121_vm7, %v2255_v15, 128 }
 0x2e7   :  { %1234 = vmin.xlane.f32.xlu1 %v2311_v38  ;;  %v1245_v55 = vshra.s32 %v2314_v39, 16 }
 0x2e8   :  { %v1097_v42 = vpop.xlane.xlu1 %1096 }
 0x2e9   :  { %vm1122_vm8 = vcmp.ge.f32.partialorder %v2165_v1, %v1097_v42  ;;  %v2319_v44 = vcvt.s32.f32 %v1245_v55 }
 0x2ea   :  { %v2322_v47 = vsel %vm1122_vm8, %v2255_v15, 128 }
 0x2eb   :  { %1248 = vmin.xlane.f32.xlu0 %v2319_v44  ;;  %v1259_v2 = vshra.s32 %v2322_v47, 16 }
 0x2ec   :  { %v1099_v48 = vpop.xlane.xlu0 %1098 }
 0x2ed   :  { %vm1123_vm9 = vcmp.ge.f32.partialorder %v2175_v6, %v1099_v48  ;;  %v2327_v51 = vcvt.s32.f32 %v1259_v2 }
 0x2ee   :  { %v2330_v53 = vsel %vm1123_vm9, %v2255_v15, 128 }
 0x2ef   :  { %1262 = vmin.xlane.f32.xlu1 %v2327_v51  ;;  %v1273_v1 = vshra.s32 %v2330_v53, 16 }
 0x2f0   :  { %v1101_v56 = vpop.xlane.xlu1 %1100 }
 0x2f1   :  { %vm1124_vm10 = vcmp.ge.f32.partialorder %v2185_v19, %v1101_v56  ;;  %v2335_v63 = vcvt.s32.f32 %v1273_v1 }
 0x2f2   :  { %v2338_v5 = vsel %vm1124_vm10, %v2255_v15, 128 }
 0x2f3   :  { %1276 = vmin.xlane.f32.xlu0 %v2335_v63  ;;  %v1287_v6 = vshra.s32 %v2338_v5, 16 }
 0x2f4   :  { %v1103_v8 = vpop.xlane.xlu0 %1102 }
 0x2f5   :  { %vm1125_vm11 = vcmp.ge.f32.partialorder %v2195_v29, %v1103_v8  ;;  %v2343_v59 = vcvt.s32.f32 %v1287_v6 }
 0x2f6   :  { %v2346_v11 = vsel %vm1125_vm11, %v2255_v15, 128 }
 0x2f7   :  { %1290 = vmin.xlane.f32.xlu1 %v2343_v59  ;;  %v1301_v19 = vshra.s32 %v2346_v11, 16 }
 0x2f8   :  { %v1105_v27 = vpop.xlane.xlu1 %1104 }
 0x2f9   :  { %vm1126_vm12 = vcmp.ge.f32.partialorder %v2205_v37, %v1105_v27  ;;  %v2351_v14 = vcvt.s32.f32 %v1301_v19 }
 0x2fa   :  { %v2354_v33 = vsel %vm1126_vm12, %v2255_v15, 128 }
 0x2fb   :  { %1304 = vmin.xlane.f32.xlu0 %v2351_v14  ;;  %v1315_v29 = vshra.s32 %v2354_v33, 16 }
 0x2fc   :  { %v1107_v23 = vpop.xlane.xlu0 %1106 }
 0x2fd   :  { %vm1127_vm13 = vcmp.ge.f32.partialorder %v2215_v45, %v1107_v23  ;;  %v2359_v61 = vcvt.s32.f32 %v1315_v29 }
 0x2fe   :  { %v2362_v3 = vsel %vm1127_vm13, %v2255_v15, 128 }
 0x2ff   :  { %1318 = vmin.xlane.f32.xlu1 %v2359_v61  ;;  %v1329_v37 = vshra.s32 %v2362_v3, 16 }
 0x300   :  { %v1109_v43 = vpop.xlane.xlu1 %1108 }
 0x301   :  { %vm1128_vm14 = vcmp.ge.f32.partialorder %v2225_v54, %v1109_v43  ;;  %v2367_v31 = vcvt.s32.f32 %v1329_v37 }
 0x302   :  { %v2370_v49 = vsel %vm1128_vm14, %v2255_v15, 128 }
 0x303   :  { %1332 = vmin.xlane.f32.xlu0 %v2367_v31  ;;  %v1343_v45 = vshra.s32 %v2370_v49, 16 }
 0x304   :  { %v889_v36 = vpop.xlane.xlu1 %888  ;;  %v1111_v55 = vpop.xlane.xlu0 %1110 }
 0x305   :  { %v2375_v42 = vsub.f32 %v2082_v18, %v889_v36  ;;  %vm1129_vm15 = vcmp.ge.f32.partialorder %v2235_v60, %v1111_v55  ;;  %v2378_v2 = vcvt.s32.f32 %v1343_v45 }
 0x306   :  { %v2381_v54 = vsel %vm1129_vm15, %v2255_v15, 128 }
 0x307   :  { %v936_v48 = vmul.f32 1.442695, %v2375_v42  ;;  %1346 = vmin.xlane.f32.xlu1 %v2378_v2  ;;  %v1357_v1 = vshra.s32 %v2381_v54, 16 }
 0x308   :  { %v893_v56 = vpop.xlane.xlu1 %892  ;;  %v891_v6 = vpop.xlane.xlu0 %890 }
 0x309   :  { %1705 = vpow2.f32 %v936_v48  ;;  %v2387_v8 = vsub.f32 %v2101_v30, %v893_v56  ;;  %v2390_v18 = vsub.f32 %v2091_v22, %v891_v6  ;;  %v2392_v60 = vcvt.s32.f32 %v1357_v1 }
 0x30b   :  { %v940_v19 = vmul.f32 1.442695, %v2387_v8  ;;  %v938_v27 = vmul.f32 1.442695, %v2390_v18  ;;  %1360 = vmin.xlane.f32.xlu0 %v2392_v60 }
 0x30c   :  { %v897_v29 = vpop.xlane.xlu1 %896  ;;  %v895_v23 = vpop.xlane.xlu0 %894 }
 0x30d   :  { %1707 = vpow2.f32 %v940_v19  ;;  %v2398_v37 = vsub.f32 %v2121_v40, %v897_v29  ;;  %v2401_v30 = vsub.f32 %v2111_v62, %v895_v23 }
 0x30e   :  { %1709 = vpow2.f32 %v938_v27 }
 0x30f   :  { %v944_v22 = vmul.f32 1.442695, %v2398_v37  ;;  %v942_v43 = vmul.f32 1.442695, %v2401_v30 }
 0x310   :  { %v901_v45 = vpop.xlane.xlu1 %900  ;;  %v899_v36 = vpop.xlane.xlu0 %898 }
 0x311   :  { %1711 = vpow2.f32 %v944_v22  ;;  %v2406_v55 = vsub.f32 %v2141_v52, %v901_v45  ;;  %v2409_v48 = vsub.f32 %v2131_v46, %v899_v36 }
 0x312   :  { %1713 = vpow2.f32 %v942_v43 }
 0x313   :  { %v948_v40 = vmul.f32 1.442695, %v2406_v55  ;;  %v946_v62 = vmul.f32 1.442695, %v2409_v48 }
 0x314   :  { %v905_v1 = vpop.xlane.xlu1 %904  ;;  %v903_v56 = vpop.xlane.xlu0 %902 }
 0x315   :  { %1715 = vpow2.f32 %v948_v40  ;;  %v2414_v6 = vsub.f32 %v2161_v7, %v905_v1  ;;  %v2417_v19 = vsub.f32 %v2151_v58, %v903_v56 }
 0x316   :  { %v1706_v27 = vpop.eup %1705  ;;  %1717 = vpow2.f32 %v946_v62 }
 0x317   :  { %v952_v52 = vmul.f32 1.442695, %v2414_v6  ;;  %v950_v46 = vmul.f32 1.442695, %v2417_v19  ;;  %968 = vadd.xlane.f32.xlu1 %v1706_v27 }
 0x318   :  { %v909_v29 = vpop.xlane.xlu1 %908  ;;  %v907_v23 = vpop.xlane.xlu0 %906 }
 0x319   :  { %1719 = vpow2.f32 %v952_v52  ;;  %v2422_v22 = vsub.f32 %v2181_v17, %v909_v29  ;;  %v2425_v43 = vsub.f32 %v2171_v12, %v907_v23 }
 0x31a   :  { %v1708_v7 = vpop.eup %1707  ;;  %1721 = vpow2.f32 %v950_v46 }
 0x31b   :  { %v1710_v58 = vpop.eup %1709  ;;  %v956_v45 = vmul.f32 1.442695, %v2422_v22  ;;  %v954_v36 = vmul.f32 1.442695, %v2425_v43  ;;  %972 = vadd.xlane.f32.xlu1 %v1708_v7 }
 0x31c   :  { %970 = vadd.xlane.f32.xlu0 %v1710_v58  ;;  %v913_v40 = vpop.xlane.xlu1 %912  ;;  %v911_v62 = vpop.xlane.xlu0 %910 }
 0x31d   :  { %1723 = vpow2.f32 %v956_v45  ;;  %v2430_v1 = vsub.f32 %v2201_v34, %v913_v40  ;;  %v2433_v17 = vsub.f32 %v2191_v25, %v911_v62 }
 0x31e   :  { %v1712_v12 = vpop.eup %1711  ;;  %1725 = vpow2.f32 %v954_v36 }
 0x31f   :  { %v1714_v56 = vpop.eup %1713  ;;  %v960_v27 = vmul.f32 1.442695, %v2430_v1  ;;  %v958_v52 = vmul.f32 1.442695, %v2433_v17  ;;  %976 = vadd.xlane.f32.xlu1 %v1712_v12 }
 0x320   :  { %974 = vadd.xlane.f32.xlu0 %v1714_v56  ;;  %v917_v46 = vpop.xlane.xlu1 %916  ;;  %v915_v29 = vpop.xlane.xlu0 %914 }
 0x321   :  { %1727 = vpow2.f32 %v960_v27  ;;  %v2438_v23 = vsub.f32 %v2221_v50, %v917_v46  ;;  %v2441_v34 = vsub.f32 %v2211_v41, %v915_v29 }
 0x322   :  { %v1716_v25 = vpop.eup %1715  ;;  %1729 = vpow2.f32 %v958_v52 }
 0x323   :  { %v1718_v7 = vpop.eup %1717  ;;  %v964_v58 = vmul.f32 1.442695, %v2438_v23  ;;  %v962_v45 = vmul.f32 1.442695, %v2441_v34  ;;  %980 = vadd.xlane.f32.xlu1 %v1716_v25  ;;  %v1146_v25 = vand.u32 65535, %v2259_v4  ;;  %v1188_v4 = vand.u32 65535, %v2282_v24 }
 0x324   :  { %978 = vadd.xlane.f32.xlu0 %v1718_v7  ;;  %v919_v36 = vpop.xlane.xlu0 %918  ;;  %v1160_v7 = vand.u32 65535, %v2266_v10  ;;  %v1216_v24 = vand.u32 65535, %v2298_v28  ;;  %v1244_v28 = vand.u32 65535, %v2314_v39  ;;  %v1272_v39 = vand.u32 65535, %v2330_v53 }
 0x325   :  { %1731 = vpow2.f32 %v964_v58  ;;  %v2446_v40 = vsub.f32 %v2231_v57, %v919_v36  ;;  %v1300_v53 = vand.u32 65535, %v2346_v11  ;;  %v1328_v11 = vand.u32 65535, %v2362_v3 }
 0x326   :  { %v1720_v62 = vpop.eup %1719  ;;  %1733 = vpow2.f32 %v962_v45  ;;  %v1148_v45 = vcvt.s32.f32 %v1146_v25  ;;  %v1218_v25 = vcvt.s32.f32 %v1216_v24  ;;  %v1356_v3 = vand.u32 65535, %v2381_v54 }
 0x327   :  { %v1722_v50 = vpop.eup %1721  ;;  %v966_v41 = vmul.f32 1.442695, %v2446_v40  ;;  %984 = vadd.xlane.f32.xlu1 %v1720_v62  ;;  %v1174_v62 = vand.u32 65535, %v2274_v13  ;;  %v1202_v13 = vand.u32 65535, %v2290_v21  ;;  %v1230_v21 = vand.u32 65535, %v2306_v35 }
 0x328   :  { %982 = vadd.xlane.f32.xlu0 %v1722_v50  ;;  %v1258_v35 = vand.u32 65535, %v2322_v47  ;;  %v1286_v47 = vand.u32 65535, %v2338_v5  ;;  %v1314_v5 = vand.u32 65535, %v2354_v33  ;;  %v1342_v33 = vand.u32 65535, %v2370_v49 }
 0x329   :  { %1735 = vpow2.f32 %v966_v41  ;;  %v1162_v41 = vcvt.s32.f32 %v1160_v7  ;;  %v1358_v49 = vcvt.s32.f32 %v1356_v3 }
 0x32a   :  { %v1724_v12 = vpop.eup %1723 }
 0x32b   :  { %v1726_v56 = vpop.eup %1725  ;;  %988 = vadd.xlane.f32.xlu1 %v1724_v12 }
 0x32c   :  { %986 = vadd.xlane.f32.xlu0 %v1726_v56  ;;  %v1176_v56 = vcvt.s32.f32 %v1174_v62  ;;  %v1246_v62 = vcvt.s32.f32 %v1244_v28 }
 0x32e   :  { %v1728_v27 = vpop.eup %1727 }
 0x32f   :  { %v1730_v52 = vpop.eup %1729  ;;  %992 = vadd.xlane.f32.xlu1 %v1728_v27 }
 0x330   :  { %990 = vadd.xlane.f32.xlu0 %v1730_v52  ;;  %v1190_v52 = vcvt.s32.f32 %v1188_v4 }
 0x332   :  { %v1732_v46 = vpop.eup %1731 }
 0x333   :  { %v1734_v29 = vpop.eup %1733  ;;  %996 = vadd.xlane.f32.xlu1 %v1732_v46 }
 0x334   :  { %994 = vadd.xlane.f32.xlu0 %v1734_v29  ;;  %v1204_v29 = vcvt.s32.f32 %v1202_v13  ;;  %v1288_v13 = vcvt.s32.f32 %v1286_v47 }
 0x336   :  { %v1736_v57 = vpop.eup %1735 }
 0x338   :  { %998 = vadd.xlane.f32.xlu0 %v1736_v57 }
 0x358   :  { %v2451_v58 = vpop.xlane.xlu1 %1150 }
 0x359   :  { %vm1152_vm0 = vcmp.eq.f32.partialorder %v2263_v9, %v2451_v58 }
 0x35a   :  { %v1153_v36 = vsel %vm1152_vm0, %v1148_v45, inf  ;;  %v1232_v45 = vcvt.s32.f32 %v1230_v21  ;;  %v1330_v21 = vcvt.s32.f32 %v1328_v11 }
 0x35b   :  { %1154 = vmin.xlane.f32.xlu1 %v1153_v36 }
 0x35c   :  { %v2456_v50 = vpop.xlane.xlu0 %1164 }
 0x35d   :  { %vm1166_vm1 = vcmp.eq.f32.partialorder %v2271_v20, %v2456_v50 }
 0x35e   :  { %v1167_v12 = vsel %vm1166_vm1, %v1162_v41, inf }
 0x35f   :  { %1168 = vmin.xlane.f32.xlu0 %v1167_v12  ;;  %v1260_v12 = vcvt.s32.f32 %v1258_v35 }
 0x360   :  { %v2461_v10 = vpop.xlane.xlu1 %1178 }
 0x361   :  { %vm1180_vm2 = vcmp.eq.f32.partialorder %v2279_v16, %v2461_v10 }
 0x362   :  { %v1181_v9 = vsel %vm1180_vm2, %v1176_v56, inf  ;;  %v1274_v56 = vcvt.s32.f32 %v1272_v39 }
 0x363   :  { %1182 = vmin.xlane.f32.xlu1 %v1181_v9 }
 0x364   :  { %v2466_v27 = vpop.xlane.xlu0 %1192 }
 0x365   :  { %vm1194_vm3 = vcmp.eq.f32.partialorder %v2287_v0, %v2466_v27 }
 0x366   :  { %v1195_v20 = vsel %vm1194_vm3, %v1190_v52, inf }
 0x367   :  { %1196 = vmin.xlane.f32.xlu0 %v1195_v20  ;;  %v1302_v20 = vcvt.s32.f32 %v1300_v53 }
 0x368   :  { %v2471_v46 = vpop.xlane.xlu1 %1206 }
 0x369   :  { %vm1208_vm4 = vcmp.eq.f32.partialorder %v2295_v26, %v2471_v46 }
 0x36a   :  { %v1209_v16 = vsel %vm1208_vm4, %v1204_v29, inf  ;;  %v1316_v29 = vcvt.s32.f32 %v1314_v5 }
 0x36b   :  { %1210 = vmin.xlane.f32.xlu1 %v1209_v16 }
 0x36c   :  { %v2476_v57 = vpop.xlane.xlu0 %1220 }
 0x36d   :  { %vm1222_vm5 = vcmp.eq.f32.partialorder %v2303_v32, %v2476_v57 }
 0x36e   :  { %v1223_v0 = vsel %vm1222_vm5, %v1218_v25, inf }
 0x36f   :  { %1224 = vmin.xlane.f32.xlu0 %v1223_v0  ;;  %v1344_v0 = vcvt.s32.f32 %v1342_v33 }
 0x370   :  { %v2481_v7 = vpop.xlane.xlu1 %1234 }
 0x371   :  { %vm1236_vm6 = vcmp.eq.f32.partialorder %v2311_v38, %v2481_v7 }
 0x372   :  { %v1237_v26 = vsel %vm1236_vm6, %v1232_v45, inf }
 0x373   :  { %1238 = vmin.xlane.f32.xlu1 %v1237_v26 }
 0x374   :  { %v2486_v36 = vpop.xlane.xlu0 %1248 }
 0x375   :  { %vm1250_vm7 = vcmp.eq.f32.partialorder %v2319_v44, %v2486_v36 }
 0x376   :  { %v1251_v32 = vsel %vm1250_vm7, %v1246_v62, inf }
 0x377   :  { %1252 = vmin.xlane.f32.xlu0 %v1251_v32 }
 0x378   :  { %v2491_v41 = vpop.xlane.xlu1 %1262 }
 0x379   :  { %vm1264_vm8 = vcmp.eq.f32.partialorder %v2327_v51, %v2491_v41 }
 0x37a   :  { %v1265_v38 = vsel %vm1264_vm8, %v1260_v12, inf }
 0x37b   :  { %1266 = vmin.xlane.f32.xlu1 %v1265_v38 }
 0x37c   :  { %v2496_v4 = vpop.xlane.xlu0 %1276 }
 0x37d   :  { %vm1278_vm9 = vcmp.eq.f32.partialorder %v2335_v63, %v2496_v4 }
 0x37e   :  { %v1279_v44 = vsel %vm1278_vm9, %v1274_v56, inf }
 0x37f   :  { %1280 = vmin.xlane.f32.xlu0 %v1279_v44 }
 0x380   :  { %v2501_v9 = vpop.xlane.xlu1 %1290 }
 0x381   :  { %vm1292_vm10 = vcmp.eq.f32.partialorder %v2343_v59, %v2501_v9 }
 0x382   :  { %v1293_v51 = vsel %vm1292_vm10, %v1288_v13, inf }
 0x383   :  { %1294 = vmin.xlane.f32.xlu1 %v1293_v51  ;;  %v1157_v51 = vcvt.f32.s32 %v2451_v58  ;;  %v1185_v58 = vcvt.f32.s32 %v2461_v10 }
 0x384   :  { %v2506_v52 = vpop.xlane.xlu0 %1304 }
 0x385   :  { %vm1306_vm11 = vcmp.eq.f32.partialorder %v2351_v14, %v2506_v52 }
 0x386   :  { %v1307_v63 = vsel %vm1306_vm11, %v1302_v20, inf }
 0x387   :  { %1308 = vmin.xlane.f32.xlu0 %v1307_v63 }
 0x388   :  { %v2511_v24 = vpop.xlane.xlu1 %1318 }
 0x389   :  { %vm1320_vm12 = vcmp.eq.f32.partialorder %v2359_v61, %v2511_v24 }
 0x38a   :  { %v1321_v59 = vsel %vm1320_vm12, %v1316_v29, inf  ;;  %v1158_v29 = vshll.u32 %v1157_v51, 16 }
 0x38b   :  { %1322 = vmin.xlane.f32.xlu1 %v1321_v59  ;;  %v1171_v59 = vcvt.f32.s32 %v2456_v50 }
 0x38c   :  { %v2516_v16 = vpop.xlane.xlu0 %1332 }
 0x38d   :  { %vm1334_vm13 = vcmp.eq.f32.partialorder %v2367_v31, %v2516_v16 }
 0x38e   :  { %v1335_v14 = vsel %vm1334_vm13, %v1330_v21, inf }
 0x38f   :  { %1336 = vmin.xlane.f32.xlu0 %v1335_v14 }
 0x390   :  { %v2521_v25 = vpop.xlane.xlu1 %1346 }
 0x391   :  { %vm1348_vm14 = vcmp.eq.f32.partialorder %v2378_v2, %v2521_v25 }
 0x392   :  { %v1349_v61 = vsel %vm1348_vm14, %v1344_v0, inf }
 0x393   :  { %1350 = vmin.xlane.f32.xlu1 %v1349_v61 }
 0x394   :  { %v2525_v28 = vpop.xlane.xlu0 %1360 }
 0x395   :  { %vm1362_vm15 = vcmp.eq.f32.partialorder %v2392_v60, %v2525_v28 }
 0x396   :  { %v1363_v45 = vsel %vm1362_vm15, %v1358_v49, inf  ;;  %v1172_v49 = vshll.u32 %v1171_v59, 16 }
 0x397   :  { %1364 = vmin.xlane.f32.xlu0 %v1363_v45 }
 0x3a0   :  { %v969_v31 = vpop.xlane.xlu1 %968 }
 0x3a1   :  { %1737 = vlog2.f32 %v969_v31 }
 0x3a4   :  { %v973_v35 = vpop.xlane.xlu1 %972 }
 0x3a5   :  { %v971_v26 = vpop.xlane.xlu0 %970 }
 0x3a6   :  { %1739 = vlog2.f32 %v971_v26 }
 0x3a7   :  { %1741 = vlog2.f32 %v973_v35 }
 0x3a8   :  { %v977_v62 = vpop.xlane.xlu1 %976 }
 0x3a9   :  { %v975_v54 = vpop.xlane.xlu0 %974 }
 0x3aa   :  { %1743 = vlog2.f32 %v975_v54 }
 0x3ab   :  { %1745 = vlog2.f32 %v977_v62 }
 0x3ac   :  { %v981_v39 = vpop.xlane.xlu1 %980 }
 0x3ad   :  { %v979_v32 = vpop.xlane.xlu0 %978 }
 0x3ae   :  { %v1738_v13 = vpop.eup %1737  ;;  %1747 = vlog2.f32 %v979_v32  ;;  %v1186_v32 = vshll.u32 %v1185_v58, 16 }
 0x3af   :  { %v1001_v5 = vmul.f32 0.6931472, %v1738_v13  ;;  %1749 = vlog2.f32 %v981_v39 }
 0x3b0   :  { %v985_v38 = vpop.xlane.xlu1 %984 }
 0x3b1   :  { %v983_v12 = vpop.xlane.xlu0 %982  ;;  %v1032_v0 = vsub.f32 %v2375_v42, %v1001_v5  ;;  %v1199_v42 = vcvt.f32.s32 %v2466_v27 }
 0x3b2   :  { %1751 = vlog2.f32 %v983_v12 }
 0x3b3   :  { %v1740_v11 = vpop.eup %1739  ;;  %1753 = vlog2.f32 %v985_v38 }
 0x3b4   :  { %v2531_v47 = vpop.xlane.xlu1 %988  ;;  %v1003_v14 = vmul.f32 0.6931472, %v1740_v11  ;;  %v1742_v61 = vpop.eup %1741 }
 0x3b5   :  { %v2529_v2 = vpop.xlane.xlu0 %986  ;;  %v1005_v50 = vmul.f32 0.6931472, %v1742_v61 }
 0x3b6   :  { %v1033_v54 = vsub.f32 %v2390_v18, %v1003_v14  ;;  %v1213_v18 = vcvt.f32.s32 %v2471_v46  ;;  %1755 = vlog2.f32 %v2529_v2 }
 0x3b7   :  { %v1744_v62 = vpop.eup %1743  ;;  %v1034_v39 = vsub.f32 %v2387_v8, %v1005_v50  ;;  %v1227_v8 = vcvt.f32.s32 %v2476_v57  ;;  %1757 = vlog2.f32 %v2531_v47 }
 0x3b8   :  { %v2535_v60 = vpop.xlane.xlu1 %992  ;;  %v1007_v5 = vmul.f32 0.6931472, %v1744_v62  ;;  %v1746_v11 = vpop.eup %1745  ;;  %v1214_v61 = vshll.u32 %v1213_v18, 16  ;;  %v1269_v18 = vcvt.f32.s32 %v2491_v41 }
 0x3b9   :  { %v2533_v56 = vpop.xlane.xlu0 %990  ;;  %v1009_v14 = vmul.f32 0.6931472, %v1746_v11 }
 0x3ba   :  { %v1035_v12 = vsub.f32 %v2401_v30, %v1007_v5  ;;  %v1228_v30 = vshll.u32 %v1227_v8, 16  ;;  %1759 = vlog2.f32 %v2533_v56 }
 0x3bb   :  { %v1036_v38 = vsub.f32 %v2398_v37, %v1009_v14  ;;  %1761 = vlog2.f32 %v2535_v60 }
 0x3bc   :  { %v2539_v53 = vpop.xlane.xlu1 %996 }
 0x3bd   :  { %v2537_v44 = vpop.xlane.xlu0 %994 }
 0x3be   :  { %1763 = vlog2.f32 %v2537_v44 }
 0x3bf   :  { %1765 = vlog2.f32 %v2539_v53 }
 0x3c1   :  { %v2542_v20 = vpop.xlane.xlu0 %998 }
 0x3c2   :  { %1767 = vlog2.f32 %v2542_v20 }
 0x3e4   :  { %v1155_v63 = vpop.xlane.xlu1 %1154 }
 0x3e5   :  { %v1156_v33 = vcvt.f32.s32 %v1155_v63 }
 0x3e7   :  { %v2545_v21 = vadd.s32 %v1158_v29, %v1156_v33  ;;  %v1200_v29 = vshll.u32 %v1199_v42, 16 }
 0x3e8   :  { %v1169_v3 = vpop.xlane.xlu0 %1168 }
 0x3e9   :  { %v1170_v45 = vcvt.f32.s32 %v1169_v3  ;;  %vm1370_vm0 = vcmp.eq.s32.totalorder %v2255_v15, %v2545_v21 }
 0x3ea   :  { %v1386_v31 = vsel %vm1370_vm0, %v1032_v0, 0.0  ;;  %v1748_v0 = vpop.eup %1747  ;;  %vm1451_vm0 = vcmp.eq.s32.totalorder %v2255_v15, 1 }
 0x3eb   :  { %v2551_v26 = vadd.s32 %v1172_v49, %v1170_v45  ;;  %1402 = vadd.xlane.f32.xlu1 %v1386_v31  ;;  %v1011_v45 = vmul.f32 0.6931472, %v1748_v0  ;;  %v1750_v50 = vpop.eup %1749  ;;  %v1283_v0 = vcvt.f32.s32 %v2496_v4 }
 0x3ec   :  { %v1183_v35 = vpop.xlane.xlu1 %1182 }
 0x3ed   :  { %v1184_v13 = vcvt.f32.s32 %v1183_v35  ;;  %vm1371_vm1 = vcmp.eq.s32.totalorder %v2255_v15, %v2551_v26  ;;  %v1241_v35 = vcvt.f32.s32 %v2481_v7  ;;  %v1037_v2 = vsub.f32 %v2409_v48, %v1011_v45 }
 0x3ee   :  { %v1387_v10 = vsel %vm1371_vm1, %v1033_v54, 0.0  ;;  %vm1434_vm1 = vcmp.eq.s32.totalorder %v2255_v15, 0 }
 0x3ef   :  { %v2557_v51 = vadd.s32 %v1186_v32, %v1184_v13  ;;  %1404 = vadd.xlane.f32.xlu0 %v1387_v10  ;;  %v1013_v32 = vmul.f32 0.6931472, %v1750_v50  ;;  %v1752_v13 = vpop.eup %1751  ;;  %v1242_v37 = vshll.u32 %v1241_v35, 16  ;;  %v1255_v10 = vcvt.f32.s32 %v2486_v36 }
 0x3f0   :  { %v1197_v63 = vpop.xlane.xlu0 %1196 }
 0x3f1   :  { %v1198_v59 = vcvt.f32.s32 %v1197_v63  ;;  %vm1372_vm2 = vcmp.eq.s32.totalorder %v2255_v15, %v2557_v51  ;;  %v1038_v47 = vsub.f32 %v2406_v55, %v1013_v32  ;;  %v1256_v48 = vshll.u32 %v1255_v10, 16 }
 0x3f2   :  { %v1388_v27 = vsel %vm1372_vm2, %v1034_v39, 0.0  ;;  %v1015_v39 = vmul.f32 0.6931472, %v1752_v13  ;;  %v1270_v55 = vshll.u32 %v1269_v18, 16  ;;  %v1325_v10 = vcvt.f32.s32 %v2511_v24 }
 0x3f3   :  { %v2563_v33 = vadd.s32 %v1200_v29, %v1198_v59  ;;  %1406 = vadd.xlane.f32.xlu1 %v1388_v27  ;;  %v1754_v29 = vpop.eup %1753 }
 0x3f4   :  { %v1211_v3 = vpop.xlane.xlu1 %1210  ;;  %v1017_v14 = vmul.f32 0.6931472, %v1754_v29  ;;  %v1039_v56 = vsub.f32 %v2417_v19, %v1015_v39  ;;  %v1284_v19 = vshll.u32 %v1283_v0, 16  ;;  %v1326_v29 = vshll.u32 %v1325_v10, 16 }
 0x3f5   :  { %v1212_v49 = vcvt.f32.s32 %v1211_v3  ;;  %vm1373_vm3 = vcmp.eq.s32.totalorder %v2255_v15, %v2563_v33 }
 0x3f6   :  { %v1389_v46 = vsel %vm1373_vm3, %v1035_v12, 0.0  ;;  %v1756_v12 = vpop.eup %1755  ;;  %v1040_v60 = vsub.f32 %v2414_v6, %v1017_v14 }
 0x3f7   :  { %v2569_v58 = vadd.s32 %v1214_v61, %v1212_v49  ;;  %1408 = vadd.xlane.f32.xlu0 %v1389_v46  ;;  %v1019_v49 = vmul.f32 0.6931472, %v1756_v12  ;;  %v1758_v45 = vpop.eup %1757 }
 0x3f8   :  { %v1225_v31 = vpop.xlane.xlu0 %1224 }
 0x3f9   :  { %v1226_v54 = vcvt.f32.s32 %v1225_v31  ;;  %vm1374_vm4 = vcmp.eq.s32.totalorder %v2255_v15, %v2569_v58  ;;  %v1297_v31 = vcvt.f32.s32 %v2501_v9  ;;  %v1041_v44 = vsub.f32 %v2425_v43, %v1019_v49 }
 0x3fa   :  { %v1390_v57 = vsel %vm1374_vm4, %v1036_v38, 0.0 }
 0x3fb   :  { %v2576_v62 = vadd.s32 %v1228_v30, %v1226_v54  ;;  %1410 = vadd.xlane.f32.xlu1 %v1390_v57  ;;  %v1021_v30 = vmul.f32 0.6931472, %v1758_v45  ;;  %v1760_v54 = vpop.eup %1759  ;;  %v1298_v6 = vshll.u32 %v1297_v31, 16  ;;  %v1311_v57 = vcvt.f32.s32 %v2506_v52 }
 0x3fc   :  { %v1239_v42 = vpop.xlane.xlu1 %1238 }
 0x3fd   :  { %v1240_v5 = vcvt.f32.s32 %v1239_v42  ;;  %vm1375_vm5 = vcmp.eq.s32.totalorder %v2255_v15, %v2576_v62  ;;  %v1042_v53 = vsub.f32 %v2422_v22, %v1021_v30  ;;  %v1312_v43 = vshll.u32 %v1311_v57, 16 }
 0x3fe   :  { %v1391_v7 = vsel %vm1375_vm5, %v1037_v2, 0.0  ;;  %v1023_v2 = vmul.f32 0.6931472, %v1760_v54  ;;  %v1339_v22 = vcvt.f32.s32 %v2516_v16 }
 0x3ff   :  { %v2583_v63 = vadd.s32 %v1242_v37, %v1240_v5  ;;  %1412 = vadd.xlane.f32.xlu0 %v1391_v7  ;;  %v1762_v37 = vpop.eup %1761 }
 0x400   :  { %v1253_v11 = vpop.xlane.xlu0 %1252  ;;  %v1025_v39 = vmul.f32 0.6931472, %v1762_v37  ;;  %v1764_v20 = vpop.eup %1763 }
 0x401   :  { %v1254_v59 = vcvt.f32.s32 %v1253_v11  ;;  %vm1376_vm6 = vcmp.eq.s32.totalorder %v2255_v15, %v2583_v63 }
 0x402   :  { %v1392_v36 = vsel %vm1376_vm6, %v1038_v47, 0.0  ;;  %v1043_v47 = vsub.f32 %v2433_v17, %v1023_v2  ;;  %v1044_v14 = vsub.f32 %v2430_v1, %v1025_v39  ;;  %v1353_v17 = vcvt.f32.s32 %v2521_v25 }
 0x403   :  { %v2590_v27 = vadd.s32 %v1256_v48, %v1254_v59  ;;  %1414 = vadd.xlane.f32.xlu1 %v1392_v36  ;;  %v1027_v59 = vmul.f32 0.6931472, %v1764_v20  ;;  %v1367_v1 = vcvt.f32.s32 %v2525_v28 }
 0x404   :  { %v1267_v3 = vpop.xlane.xlu1 %1266 }
 0x405   :  { %v1268_v61 = vcvt.f32.s32 %v1267_v3  ;;  %vm1377_vm7 = vcmp.eq.s32.totalorder %v2255_v15, %v2590_v27  ;;  %v1766_v3 = vpop.eup %1765 }
 0x406   :  { %v1393_v41 = vsel %vm1377_vm7, %v1039_v56, 0.0  ;;  %v1340_v56 = vshll.u32 %v1339_v22, 16  ;;  %v1029_v0 = vmul.f32 0.6931472, %v1766_v3  ;;  %v1768_v49 = vpop.eup %1767 }
 0x407   :  { %v2597_v8 = vadd.s32 %v1270_v55, %v1268_v61  ;;  %1416 = vadd.xlane.f32.xlu0 %v1393_v41  ;;  %v1045_v41 = vsub.f32 %v2441_v34, %v1027_v59 }
 0x408   :  { %v1281_v46 = vpop.xlane.xlu0 %1280 }
 0x409   :  { %v1282_v38 = vcvt.f32.s32 %v1281_v46  ;;  %vm1378_vm8 = vcmp.eq.s32.totalorder %v2255_v15, %v2597_v8  ;;  %v1354_v46 = vshll.u32 %v1353_v17, 16 }
 0x40a   :  { %v1394_v4 = vsel %vm1378_vm8, %v1040_v60, 0.0 }
 0x40b   :  { %v2604_v50 = vadd.s32 %v1284_v19, %v1282_v38  ;;  %1418 = vadd.xlane.f32.xlu1 %v1394_v4  ;;  %v1031_v19 = vmul.f32 0.6931472, %v1768_v49  ;;  %v1046_v38 = vsub.f32 %v2438_v23, %v1029_v0  ;;  %v1368_v4 = vshll.u32 %v1367_v1, 16 }
 0x40c   :  { %v1295_v35 = vpop.xlane.xlu1 %1294  ;;  %v1435_v23 = vcvt.s32.f32 %v2545_v21  ;;  %v1437_v21 = vcvt.s32.f32 %v2557_v51  ;;  %v1439_v51 = vcvt.s32.f32 %v2569_v58  ;;  %v1441_v58 = vcvt.s32.f32 %v2583_v63 }
 0x40d   :  { %v1296_v32 = vcvt.f32.s32 %v1295_v35  ;;  %vm1379_vm9 = vcmp.eq.s32.totalorder %v2255_v15, %v2604_v50  ;;  %v1047_v28 = vsub.f32 %v2446_v40, %v1031_v19  ;;  %v1436_v40 = vcvt.s32.f32 %v2551_v26 }
 0x40e   :  { %v1395_v9 = vsel %vm1379_vm9, %v1041_v44, 0.0  ;;  %v1438_v26 = vcvt.s32.f32 %v2563_v33  ;;  %v1440_v33 = vcvt.s32.f32 %v2576_v62  ;;  %v1442_v62 = vcvt.s32.f32 %v2590_v27 }
 0x40f   :  { %v2611_v42 = vadd.s32 %v1298_v6, %v1296_v32  ;;  %1420 = vadd.xlane.f32.xlu0 %v1395_v9  ;;  %v1443_v63 = vcvt.s32.f32 %v2597_v8  ;;  %v1444_v27 = vcvt.s32.f32 %v2604_v50 }
 0x410   :  { %v1309_v13 = vpop.xlane.xlu0 %1308 }
 0x411   :  { %v1310_v5 = vcvt.f32.s32 %v1309_v13  ;;  %vm1380_vm10 = vcmp.eq.s32.totalorder %v2255_v15, %v2611_v42  ;;  %v1445_v8 = vcvt.s32.f32 %v2611_v42 }
 0x412   :  { %v1396_v52 = vsel %vm1380_vm10, %v1042_v53, 0.0 }
 0x413   :  { %v2618_v7 = vadd.s32 %v1312_v43, %v1310_v5  ;;  %1422 = vadd.xlane.f32.xlu1 %v1396_v52 }
 0x414   :  { %v1323_v11 = vpop.xlane.xlu1 %1322 }
 0x415   :  { %v1324_v48 = vcvt.f32.s32 %v1323_v11  ;;  %vm1381_vm11 = vcmp.eq.s32.totalorder %v2255_v15, %v2618_v7  ;;  %v1446_v50 = vcvt.s32.f32 %v2618_v7 }
 0x416   :  { %v1397_v24 = vsel %vm1381_vm11, %v1043_v47, 0.0 }
 0x417   :  { %v2624_v18 = vadd.s32 %v1326_v29, %v1324_v48  ;;  %1424 = vadd.xlane.f32.xlu0 %v1397_v24 }
 0x418   :  { %v1337_v36 = vpop.xlane.xlu0 %1336 }
 0x419   :  { %v1338_v12 = vcvt.f32.s32 %v1337_v36  ;;  %vm1382_vm12 = vcmp.eq.s32.totalorder %v2255_v15, %v2624_v18  ;;  %v1447_v42 = vcvt.s32.f32 %v2624_v18 }
 0x41a   :  { %v1398_v16 = vsel %vm1382_vm12, %v1044_v14, 0.0 }
 0x41b   :  { %v2630_v55 = vadd.s32 %v1340_v56, %v1338_v12  ;;  %1426 = vadd.xlane.f32.xlu1 %v1398_v16 }
 0x41c   :  { %v1351_v61 = vpop.xlane.xlu1 %1350 }
 0x41d   :  { %v1352_v60 = vcvt.f32.s32 %v1351_v61  ;;  %vm1383_vm13 = vcmp.eq.s32.totalorder %v2255_v15, %v2630_v55  ;;  %v1448_v7 = vcvt.s32.f32 %v2630_v55 }
 0x41e   :  { %v1399_v25 = vsel %vm1383_vm13, %v1045_v41, 0.0 }
 0x41f   :  { %v2636_v45 = vadd.s32 %v1354_v46, %v1352_v60  ;;  %1428 = vadd.xlane.f32.xlu0 %v1399_v25 }
 0x420   :  { %v1365_v31 = vpop.xlane.xlu0 %1364 }
 0x421   :  { %v1366_v30 = vcvt.f32.s32 %v1365_v31  ;;  %vm1384_vm14 = vcmp.eq.s32.totalorder %v2255_v15, %v2636_v45  ;;  %v1449_v18 = vcvt.s32.f32 %v2636_v45 }
 0x422   :  { %v1400_v34 = vsel %vm1384_vm14, %v1046_v38, 0.0 }
 0x423   :  { %v2641_v35 = vadd.s32 %v1368_v4, %v1366_v30  ;;  %1430 = vadd.xlane.f32.xlu1 %v1400_v34 }
 0x425   :  { %vm1385_vm15 = vcmp.eq.s32.totalorder %v2255_v15, %v2641_v35  ;;  %v1450_v55 = vcvt.s32.f32 %v2641_v35 }
 0x426   :  { %v1401_v44 = vsel %vm1385_vm15, %v1047_v28, 0.0 }
 0x427   :  { %1432 = vadd.xlane.f32.xlu0 %v1401_v44 }
 0x474   :  { %v1403_v54 = vpop.xlane.xlu1 %1402 }
 0x475   :  { %v1452_v6 = vsel %vm1451_vm0, %v1403_v54, 0.0 }
 0x476   :  { %v1468_v57 = vsel %vm1434_vm1, %v1435_v23, %v1452_v6 }
 0x477   :  { %1484 = vst [vmem:[#allocation7] sm:$0xff] %v1468_v57 }
 0x478   :  { %v1405_v32 = vpop.xlane.xlu0 %1404 }
 0x479   :  { %v1453_v9 = vsel %vm1451_vm0, %v1405_v32, 0.0 }
 0x47a   :  { %v1469_v2 = vsel %vm1434_vm1, %v1436_v40, %v1453_v9 }
 0x47b   :  { %1485 = vst [vmem:[#allocation7 + $0x8] sm:$0xff] %v1469_v2 }
 0x47c   :  { %v1407_v13 = vpop.xlane.xlu1 %1406 }
 0x47d   :  { %v1454_v53 = vsel %vm1451_vm0, %v1407_v13, 0.0 }
 0x47e   :  { %v1470_v37 = vsel %vm1434_vm1, %v1437_v21, %v1454_v53 }
 0x47f   :  { %1486 = vst [vmem:[#allocation7 + $0x10] sm:$0xff] %v1470_v37 }
 0x480   :  { %v1409_v43 = vpop.xlane.xlu0 %1408 }
 0x481   :  { %v1455_v10 = vsel %vm1451_vm0, %v1409_v43, 0.0 }
 0x482   :  { %v1471_v5 = vsel %vm1434_vm1, %v1438_v26, %v1455_v10 }
 0x483   :  { %1487 = vst [vmem:[#allocation7 + $0x18] sm:$0xff] %v1471_v5 }
 0x484   :  { %v1411_v52 = vpop.xlane.xlu1 %1410 }
 0x485   :  { %v1456_v39 = vsel %vm1451_vm0, %v1411_v52, 0.0 }
 0x486   :  { %v1472_v11 = vsel %vm1434_vm1, %v1439_v51, %v1456_v39 }
 0x487   :  { %1488 = vst [vmem:[#allocation7 + $0x20] sm:$0xff] %v1472_v11 }
 0x488   :  { %v1413_v47 = vpop.xlane.xlu0 %1412 }
 0x489   :  { %v1457_v20 = vsel %vm1451_vm0, %v1413_v47, 0.0 }
 0x48a   :  { %v1473_v29 = vsel %vm1434_vm1, %v1440_v33, %v1457_v20 }
 0x48b   :  { %1489 = vst [vmem:[#allocation7 + $0x28] sm:$0xff] %v1473_v29 }
 0x48c   :  { %v1415_v22 = vpop.xlane.xlu1 %1414 }
 0x48d   :  { %v1458_v48 = vsel %vm1451_vm0, %v1415_v22, 0.0 }
 0x48e   :  { %v1474_v24 = vsel %vm1434_vm1, %v1441_v58, %v1458_v48 }
 0x48f   :  { %1490 = vst [vmem:[#allocation7 + $0x30] sm:$0xff] %v1474_v24 }
 0x490   :  { %v1417_v59 = vpop.xlane.xlu0 %1416 }
 0x491   :  { %v1459_v36 = vsel %vm1451_vm0, %v1417_v59, 0.0 }
 0x492   :  { %v1475_v14 = vsel %vm1434_vm1, %v1442_v62, %v1459_v36 }
 0x493   :  { %1491 = vst [vmem:[#allocation7 + $0x38] sm:$0xff] %v1475_v14 }
 0x494   :  { %v1419_v3 = vpop.xlane.xlu1 %1418 }
 0x495   :  { %v1460_v56 = vsel %vm1451_vm0, %v1419_v3, 0.0 }
 0x496   :  { %v1476_v17 = vsel %vm1434_vm1, %v1443_v63, %v1460_v56 }
 0x497   :  { %1492 = vst [vmem:[#allocation7 + $0x40] sm:$0xff] %v1476_v17 }
 0x498   :  { %v1421_v12 = vpop.xlane.xlu0 %1420 }
 0x499   :  { %v1461_v16 = vsel %vm1451_vm0, %v1421_v12, 0.0 }
 0x49a   :  { %v1477_v0 = vsel %vm1434_vm1, %v1444_v27, %v1461_v16 }
 0x49b   :  { %1493 = vst [vmem:[#allocation7 + $0x48] sm:$0xff] %v1477_v0 }
 0x49c   :  { %v1423_v61 = vpop.xlane.xlu1 %1422 }
 0x49d   :  { %v1462_v41 = vsel %vm1451_vm0, %v1423_v61, 0.0 }
 0x49e   :  { %v1478_v49 = vsel %vm1434_vm1, %v1445_v8, %v1462_v41 }
 0x49f   :  { %1494 = vst [vmem:[#allocation7 + $0x50] sm:$0xff] %v1478_v49 }
 0x4a0   :  { %v1425_v46 = vpop.xlane.xlu0 %1424 }
 0x4a1   :  { %v1463_v1 = vsel %vm1451_vm0, %v1425_v46, 0.0 }
 0x4a2   :  { %v1479_v60 = vsel %vm1434_vm1, %v1446_v50, %v1463_v1 }
 0x4a3   :  { %1495 = vst [vmem:[#allocation7 + $0x58] sm:$0xff] %v1479_v60 }
 0x4a4   :  { %v1427_v25 = vpop.xlane.xlu1 %1426 }
 0x4a5   :  { %v1464_v19 = vsel %vm1451_vm0, %v1427_v25, 0.0 }
 0x4a6   :  { %v1480_v31 = vsel %vm1434_vm1, %v1447_v42, %v1464_v19 }
 0x4a7   :  { %1496 = vst [vmem:[#allocation7 + $0x60] sm:$0xff] %v1480_v31 }
 0x4a8   :  { %v1429_v38 = vpop.xlane.xlu0 %1428 }
 0x4a9   :  { %v1465_v4 = vsel %vm1451_vm0, %v1429_v38, 0.0 }
 0x4aa   :  { %v1481_v30 = vsel %vm1434_vm1, %v1448_v7, %v1465_v4 }
 0x4ab   :  { %1497 = vst [vmem:[#allocation7 + $0x68] sm:$0xff] %v1481_v30 }
 0x4ac   :  { %v1431_v34 = vpop.xlane.xlu1 %1430 }
 0x4ad   :  { %v1466_v28 = vsel %vm1451_vm0, %v1431_v34, 0.0 }
 0x4ae   :  { %v1482_v44 = vsel %vm1434_vm1, %v1449_v18, %v1466_v28 }
 0x4af   :  { %1498 = vst [vmem:[#allocation7 + $0x70] sm:$0xff] %v1482_v44 }
 0x4b0   :  { %v1433_v23 = vpop.xlane.xlu0 %1432 }
 0x4b1   :  { %v1467_v54 = vsel %vm1451_vm0, %v1433_v23, 0.0 }
 0x4b2   :  { %v1483_v45 = vsel %vm1434_vm1, %v1450_v55, %v1467_v54 }
 0x4b3   :  { %1499 = vst [vmem:[#allocation7 + $0x78] sm:$0xff] %v1483_v45 }
 0x4b4   :  { %1820 = shalt.err (!%p1817_p0)
}
 0x4b5   :  { %1511 = dma.vmem_to_hbm [thread:$0]  %s1506_s15, 2048, %s2742_s8, [#allocation4], %s1836_s30, %s1836_s30, %s1837_s9  }
 0x4b6   :  { %1833 = dma.done.wait [#allocation4], 2048  }
 0x4b7   :  { %1834 = vsyncadd [#allocation4], 4294965248 }
 0x4b8   :  { %1515 = vsyncpa [#allocation3], 1 }
 0x4b9   :  { %1516 = vsyncpa [#allocation6], 1 }
 0x4ba   :  { %1517 = vsyncpa [#allocation4], 1 }

</bundles_post_ra>
